<compile_context>
chip_gen: v6e
topology: v6e:2x2x1
jax: 0.10.0
libtpu: 0.0.40
codegen_flags: <defaults>
</compile_context>

<pallas_src>
import jax
import jax.numpy as jnp
from jax.experimental import pallas as pl
from jax.experimental.pallas import tpu as pltpu


# ----------------------------------------------------------------------
# Fused multi-layer bidirectional GRU kernel (single pallas_call)
# ----------------------------------------------------------------------
def _make_bigru_kernel(*, T: int, Bp: int, E: int, H: int, n_layers: int):
    G2, G4, G6 = 2 * H, 4 * H, 6 * H

    def kernel(*refs):
        it = iter(refs)
        x_ref = next(it)          # (T*Bp, E)   embedded input, normal time order
        xr_ref = next(it)         # (T*Bp, E)   embedded input, time-reversed
        mask_ref = next(it)       # (T*Bp, 2H)  f32 {0,1} validity mask, mixed layout
        w0a_ref = next(it)        # (E, 6H)     layer-0 fwd weights (gate-reordered)
        w0b_ref = next(it)        # (E, 6H)     layer-0 bwd weights
        if n_layers > 1:
            wua_ref = next(it)    # (n_layers-1, 2H, 6H) upper-layer weights (normal-order input)
            wub_ref = next(it)    # (n_layers-1, 2H, 6H) upper-layer weights (reversed input)
        whh_ref = next(it)        # (n_layers, 2H, 6H)   block-diag recurrent weights
        bih_ref = next(it)        # (n_layers, 1, 6H)    hoisted bias (b_ih + r/z part of b_hh)
        bhn_ref = next(it)        # (n_layers, 1, 2H)    n-gate part of b_hh
        out_ref = next(it)        # (T*Bp, 2H)  last-layer output, mixed layout
        hid_ref = next(it)        # (n_layers, Bp, H)    h_f + h_b per layer
        seq_ref = next(it)        # (T*Bp, 2H)  scratch: inter-layer output (mixed layout)
        rev_ref = next(it)        # (T*Bp, 2H)  scratch: time-reversed seq
        xg_ref = next(it)         # (T*Bp, 6H)  scratch: hoisted gate projections

        # Per-step freeze masks loaded ONCE, reused across layers & directions.
        # Mixed layout: cols [0:H] fwd-valid at time t, cols [H:2H] bwd-valid at T-1-t.
        m_step = [mask_ref[t * Bp:(t + 1) * Bp, :] != 0.0 for t in range(T)]

        for layer in range(n_layers):
            # ---- hoisted input projection: all T steps, both directions, one pass ----
            if layer == 0:
                xg_ref[...] = (
                    jnp.dot(x_ref[...], w0a_ref[...],
                            preferred_element_type=jnp.float32)
                    + jnp.dot(xr_ref[...], w0b_ref[...],
                              preferred_element_type=jnp.float32)
                    + bih_ref[0]
                )
            else:
                # time-reverse the previous layer's mixed output (bulk, off the chain)
                for t in range(T):
                    rev_ref[t * Bp:(t + 1) * Bp, :] = \
                        seq_ref[(T - 1 - t) * Bp:(T - t) * Bp, :]
                xg_ref[...] = (
                    jnp.dot(seq_ref[...], wua_ref[layer - 1],
                            preferred_element_type=jnp.float32)
                    + jnp.dot(rev_ref[...], wub_ref[layer - 1],
                              preferred_element_type=jnp.float32)
                    + bih_ref[layer]
                )

            whh = whh_ref[layer]                                  # (2H, 6H) resident
            bhn = jnp.broadcast_to(bhn_ref[layer], (Bp, G2))      # broadcast hoisted

            # h = [h_f | h_b], loop-carried in registers (no VMEM round trip)
            h = jnp.zeros((Bp, G2), jnp.float32)
            dst = out_ref if layer == n_layers - 1 else seq_ref

            # ---- recurrence: statically unrolled; both directions fused per step ----
            for t in range(T):
                xg = xg_ref[t * Bp:(t + 1) * Bp, :]               # (Bp, 6H)
                hg = jnp.dot(h, whh, preferred_element_type=jnp.float32)
                # ONE sigmoid covers r/z of both directions; ONE tanh covers n.
                sg = jax.nn.sigmoid(xg[:, :G4] + hg[:, :G4])
                r = sg[:, :G2]
                z = sg[:, G2:G4]
                n = jnp.tanh(xg[:, G4:] + r * (hg[:, G4:] + bhn))
                h_new = (1.0 - z) * n + z * h
                h = jnp.where(m_step[t], h_new, h)                # packed-seq freeze
                dst[t * Bp:(t + 1) * Bp, :] = h                   # single lane-dense store

            hid_ref[layer, :, :] = h[:, :H] + h[:, H:]            # written once per layer

        # pad_packed_sequence semantics: zero outputs past each row's length (bulk pass)
        out_ref[...] = out_ref[...] * mask_ref[...]

    return kernel


def bigru_encode(emb, lens, packed, *, hid_dim, n_layers):
    """Fused multi-layer bidirectional GRU with packed-sequence semantics.

    emb:  (T, Bp, E) float32, batch padded to a multiple of 8
    lens: (Bp,)      int32 valid lengths (0 for padding rows)
    returns out_mixed (T, Bp, 2H) -- cols [0:H] fwd output at t,
            cols [H:2H] bwd output at T-1-t -- and hidden (n_layers, Bp, H).
    """
    T, Bp, E = emb.shape
    H = hid_dim

    x2d = emb.reshape(T * Bp, E)
    xr2d = jnp.flip(emb, axis=0).reshape(T * Bp, E)

    # validity mask in the mixed layout used by the kernel
    t_idx = jnp.arange(T, dtype=jnp.int32)
    fwd_v = (t_idx[:, None] < lens[None, :]).astype(jnp.float32)          # (T, Bp)
    bwd_v = ((T - 1 - t_idx)[:, None] < lens[None, :]).astype(jnp.float32)
    mask = jnp.concatenate(
        [jnp.broadcast_to(fwd_v[:, :, None], (T, Bp, H)),
         jnp.broadcast_to(bwd_v[:, :, None], (T, Bp, H))],
        axis=-1).reshape(T * Bp, 2 * H)

    inputs = [x2d, xr2d, mask, packed["w0a"], packed["w0b"]]
    if n_layers > 1:
        inputs += [packed["wua"], packed["wub"]]
    inputs += [packed["whh"], packed["bih"], packed["bhn"]]

    kernel = _make_bigru_kernel(T=T, Bp=Bp, E=E, H=H, n_layers=n_layers)

    out_mixed, hidden = pl.pallas_call(
        kernel,
        out_shape=(
            jax.ShapeDtypeStruct((T * Bp, 2 * H), jnp.float32),
            jax.ShapeDtypeStruct((n_layers, Bp, H), jnp.float32),
        ),
        in_specs=[pl.BlockSpec(memory_space=pltpu.MemorySpace.VMEM)] * len(inputs),
        out_specs=(
            pl.BlockSpec(memory_space=pltpu.MemorySpace.VMEM),
            pl.BlockSpec(memory_space=pltpu.MemorySpace.VMEM),
        ),
        scratch_shapes=[
            pltpu.VMEM((T * Bp, 2 * H), jnp.float32),   # seq (inter-layer, mixed layout)
            pltpu.VMEM((T * Bp, 2 * H), jnp.float32),   # rev (time-reversed seq)
            pltpu.VMEM((T * Bp, 6 * H), jnp.float32),   # xg  (hoisted gate projections)
        ],
    )(*inputs)

    return out_mixed.reshape(T, Bp, 2 * H), hidden


# ----------------------------------------------------------------------
# Parameter construction (PyTorch-style shapes) + one-time packing
# ----------------------------------------------------------------------
def init_encoder_params(key, input_dim, emb_dim, hid_dim, n_layers):
    keys = jax.random.split(key, 1 + 8 * n_layers)
    params = {"embedding": jax.random.normal(keys[0], (input_dim, emb_dim), jnp.float32)}
    bound = 1.0 / float(hid_dim) ** 0.5
    gru = []
    ki = 1
    for layer in range(n_layers):
        in_size = emb_dim if layer == 0 else 2 * hid_dim
        shapes = {
            "w_ih_f": (3 * hid_dim, in_size), "w_hh_f": (3 * hid_dim, hid_dim),
            "b_ih_f": (3 * hid_dim,), "b_hh_f": (3 * hid_dim,),
            "w_ih_b": (3 * hid_dim, in_size), "w_hh_b": (3 * hid_dim, hid_dim),
            "b_ih_b": (3 * hid_dim,), "b_hh_b": (3 * hid_dim,),
        }
        lp = {}
        for name, shp in shapes.items():
            lp[name] = jax.random.uniform(keys[ki], shp, jnp.float32, -bound, bound)
            ki += 1
        gru.append(lp)
    params["gru"] = gru
    return params


def pack_encoder_params(params, *, hid_dim):
    """One-time weight packing: transpose, gate reorder [r_f r_b | z_f z_b | n_f n_b],
    block-diagonal W_hh fusion, bias folding, and per-kind stacking."""
    H = hid_dim
    G6 = 6 * H
    gru = params["gru"]
    n_layers = len(gru)

    def place(w, d):
        """w: PyTorch weight (3H, I), gate rows [r; z; n]. Returns (I, 6H) with this
        direction's gates placed in the fused column order (other dir's cols = 0)."""
        wT = jnp.asarray(w, jnp.float32).T                                      # (I, 3H)
        out = jnp.zeros((wT.shape[0], G6), jnp.float32)
        out = out.at[:, d * H:(d + 1) * H].set(wT[:, 0:H])                      # r
        out = out.at[:, 2 * H + d * H:2 * H + (d + 1) * H].set(wT[:, H:2 * H])  # z
        out = out.at[:, 4 * H + d * H:4 * H + (d + 1) * H].set(wT[:, 2 * H:])   # n
        return out

    def place_bias(b_f, b_b):
        b_f = jnp.asarray(b_f, jnp.float32)
        b_b = jnp.asarray(b_b, jnp.float32)
        return jnp.concatenate([b_f[0:H], b_b[0:H],
                                b_f[H:2 * H], b_b[H:2 * H],
                                b_f[2 * H:], b_b[2 * H:]])

    w0a = place(gru[0]["w_ih_f"], 0)
    w0b = place(gru[0]["w_ih_b"], 1)

    wua, wub, whh, bih, bhn = [], [], [], [], []
    for l, p in enumerate(gru):
        # block-diagonal recurrent weight: rows 0:H act on h_f, rows H:2H on h_b
        whh.append(jnp.concatenate([place(p["w_hh_f"], 0), place(p["w_hh_b"], 1)], axis=0))

        b_ih_cat = place_bias(p["b_ih_f"], p["b_ih_b"])
        b_hh_cat = place_bias(p["b_hh_f"], p["b_hh_b"])
        # r/z parts of b_hh fold into the hoisted projection; n part stays per-step.
        bih.append((b_ih_cat + jnp.concatenate(
            [b_hh_cat[:4 * H], jnp.zeros((2 * H,), jnp.float32)])).reshape(1, G6))
        bhn.append(b_hh_cat[4 * H:].reshape(1, 2 * H))

        if l > 0:
            vf = place(p["w_ih_f"], 0)                            # (2H, 6H)
            vb = place(p["w_ih_b"], 1)
            # split for the mixed-layout inter-layer buffer:
            #   xg = seq @ W_A + rev(seq) @ W_B + bias
            wua.append(jnp.concatenate([vf[:H, :], vb[H:, :]], axis=0))
            wub.append(jnp.concatenate([vb[:H, :], vf[H:, :]], axis=0))

    packed = {
        "embedding": jnp.asarray(params["embedding"], jnp.float32),
        "w0a": w0a, "w0b": w0b,
        "whh": jnp.stack(whh), "bih": jnp.stack(bih), "bhn": jnp.stack(bhn),
    }
    if n_layers > 1:
        packed["wua"] = jnp.stack(wua)
        packed["wub"] = jnp.stack(wub)
    return packed


# ----------------------------------------------------------------------
# Encoder forward (matches PyTorch Encoder.forward semantics, jittable)
# ----------------------------------------------------------------------
def encoder_forward(packed, src, input_length, *, hid_dim, n_layers, max_len):
    """src: (T, B) int32 token ids; input_length: (B,) int32.
    max_len: static int == int(max(input_length)) (pad_packed_sequence length)."""
    T, B = src.shape
    H = hid_dim

    # Embedding lookup (gather stays in plain JAX / XLA).
    embedded = packed["embedding"][src].astype(jnp.float32)       # (T, B, E)
    # TODO(synk): nn.Dropout is stochastic at train time; inference => identity.

    # Pad batch to 8 sublanes; padded rows get length 0 (masked inside the kernel).
    Bp = max(8, ((B + 7) // 8) * 8)
    pad_b = Bp - B
    emb_p = jnp.pad(embedded, ((0, 0), (0, pad_b), (0, 0)))
    lens_p = jnp.pad(jnp.asarray(input_length, jnp.int32), (0, pad_b))

    out_mixed, hidden = bigru_encode(emb_p, lens_p, packed,
                                     hid_dim=hid_dim, n_layers=n_layers)

    out_f = out_mixed[:, :, :H]                        # forward output at time t
    out_b = jnp.flip(out_mixed[:, :, H:], axis=0)      # backward output at time t
    out_f = out_f[:max_len, :B, :]
    out_b = out_b[:max_len, :B, :]
    hidden = hidden[:, :B, :]                          # h_f + h_b per layer

    problem_output = out_f[-1] + out_b[0]   # output[-1,:,:H] + output[0,:,H:]
    output = out_f + out_b                  # output[:,:,H:]  + output[:,:,:H]
    return output, hidden, problem_output


# ----------------------------------------------------------------------
if __name__ == "__main__":
    INPUT_DIM = 50      # vocab size
    EMB_DIM = 32
    HID_DIM = 32
    N_LAYERS = 2
    T, B = 8, 4

    key = jax.random.PRNGKey(0)
    k_param, k_src = jax.random.split(key)

    raw_params = init_encoder_params(k_param, INPUT_DIM, EMB_DIM, HID_DIM, N_LAYERS)
    packed = pack_encoder_params(raw_params, hid_dim=HID_DIM)   # one-time packing

    src = jax.random.randint(k_src, (T, B), 0, INPUT_DIM, dtype=jnp.int32)
    input_length = jnp.array([8, 7, 5, 3], dtype=jnp.int32)     # sorted descending

    # static max_len computed in the driver (no device->host sync inside jit)
    max_len = int(jax.device_get(input_length).max())

    fwd = jax.jit(encoder_forward, static_argnames=("hid_dim", "n_layers", "max_len"))
    output, hidden, problem_output = fwd(packed, src, input_length,
                                         hid_dim=HID_DIM, n_layers=N_LAYERS,
                                         max_len=max_len)
    jax.block_until_ready((output, hidden, problem_output))

    assert output.shape == (max_len, B, HID_DIM)
    assert hidden.shape == (N_LAYERS, B, HID_DIM)
    assert problem_output.shape == (B, HID_DIM)
    print("KERNEL_OK")
</pallas_src>

<mosaic_0001>
module attributes {stable_mosaic.version = 11 : i64} {
  func.func @kernel(%arg0: memref<64x32xf32, #tpu.memory_space<vmem>>, %arg1: memref<64x32xf32, #tpu.memory_space<vmem>>, %arg2: memref<64x64xf32, #tpu.memory_space<vmem>>, %arg3: memref<32x192xf32, #tpu.memory_space<vmem>>, %arg4: memref<32x192xf32, #tpu.memory_space<vmem>>, %arg5: memref<1x64x192xf32, #tpu.memory_space<vmem>>, %arg6: memref<1x64x192xf32, #tpu.memory_space<vmem>>, %arg7: memref<2x64x192xf32, #tpu.memory_space<vmem>>, %arg8: memref<2x1x192xf32, #tpu.memory_space<vmem>>, %arg9: memref<2x1x64xf32, #tpu.memory_space<vmem>>, %arg10: memref<64x64xf32, #tpu.memory_space<vmem>>, %arg11: memref<2x8x32xf32, #tpu.memory_space<vmem>>, %arg12: memref<64x64xf32, #tpu.memory_space<vmem>>, %arg13: memref<64x64xf32, #tpu.memory_space<vmem>>, %arg14: memref<64x192xf32, #tpu.memory_space<vmem>>) attributes {dimension_semantics = [], scalar_prefetch = 0 : i64, scratch_operands = 3 : i64, tpu.core_type = #tpu.core_type<tc>} {
    %c0 = arith.constant 0 : index
    %c0_0 = arith.constant 0 : index
    %0 = vector.load %arg2[%c0, %c0_0] : memref<64x64xf32, #tpu.memory_space<vmem>>, vector<8x64xf32>
    %cst = arith.constant 0.000000e+00 : f32
    %1 = vector.broadcast %cst : f32 to vector<8x64xf32>
    %2 = arith.cmpf one, %0, %1 : vector<8x64xf32>
    %c8 = arith.constant 8 : index
    %c0_1 = arith.constant 0 : index
    %3 = vector.load %arg2[%c8, %c0_1] : memref<64x64xf32, #tpu.memory_space<vmem>>, vector<8x64xf32>
    %cst_2 = arith.constant 0.000000e+00 : f32
    %4 = vector.broadcast %cst_2 : f32 to vector<8x64xf32>
    %5 = arith.cmpf one, %3, %4 : vector<8x64xf32>
    %c16 = arith.constant 16 : index
    %c0_3 = arith.constant 0 : index
    %6 = vector.load %arg2[%c16, %c0_3] : memref<64x64xf32, #tpu.memory_space<vmem>>, vector<8x64xf32>
    %cst_4 = arith.constant 0.000000e+00 : f32
    %7 = vector.broadcast %cst_4 : f32 to vector<8x64xf32>
    %8 = arith.cmpf one, %6, %7 : vector<8x64xf32>
    %c24 = arith.constant 24 : index
    %c0_5 = arith.constant 0 : index
    %9 = vector.load %arg2[%c24, %c0_5] : memref<64x64xf32, #tpu.memory_space<vmem>>, vector<8x64xf32>
    %cst_6 = arith.constant 0.000000e+00 : f32
    %10 = vector.broadcast %cst_6 : f32 to vector<8x64xf32>
    %11 = arith.cmpf one, %9, %10 : vector<8x64xf32>
    %c32 = arith.constant 32 : index
    %c0_7 = arith.constant 0 : index
    %12 = vector.load %arg2[%c32, %c0_7] : memref<64x64xf32, #tpu.memory_space<vmem>>, vector<8x64xf32>
    %cst_8 = arith.constant 0.000000e+00 : f32
    %13 = vector.broadcast %cst_8 : f32 to vector<8x64xf32>
    %14 = arith.cmpf one, %12, %13 : vector<8x64xf32>
    %c40 = arith.constant 40 : index
    %c0_9 = arith.constant 0 : index
    %15 = vector.load %arg2[%c40, %c0_9] : memref<64x64xf32, #tpu.memory_space<vmem>>, vector<8x64xf32>
    %cst_10 = arith.constant 0.000000e+00 : f32
    %16 = vector.broadcast %cst_10 : f32 to vector<8x64xf32>
    %17 = arith.cmpf one, %15, %16 : vector<8x64xf32>
    %c48 = arith.constant 48 : index
    %c0_11 = arith.constant 0 : index
    %18 = vector.load %arg2[%c48, %c0_11] : memref<64x64xf32, #tpu.memory_space<vmem>>, vector<8x64xf32>
    %cst_12 = arith.constant 0.000000e+00 : f32
    %19 = vector.broadcast %cst_12 : f32 to vector<8x64xf32>
    %20 = arith.cmpf one, %18, %19 : vector<8x64xf32>
    %c56 = arith.constant 56 : index
    %c0_13 = arith.constant 0 : index
    %21 = vector.load %arg2[%c56, %c0_13] : memref<64x64xf32, #tpu.memory_space<vmem>>, vector<8x64xf32>
    %cst_14 = arith.constant 0.000000e+00 : f32
    %22 = vector.broadcast %cst_14 : f32 to vector<8x64xf32>
    %23 = arith.cmpf one, %21, %22 : vector<8x64xf32>
    %c0_15 = arith.constant 0 : index
    %c0_16 = arith.constant 0 : index
    %24 = vector.load %arg0[%c0_15, %c0_16] : memref<64x32xf32, #tpu.memory_space<vmem>>, vector<64x32xf32>
    %c0_17 = arith.constant 0 : index
    %c0_18 = arith.constant 0 : index
    %25 = vector.load %arg3[%c0_17, %c0_18] : memref<32x192xf32, #tpu.memory_space<vmem>>, vector<32x192xf32>
    %cst_19 = arith.constant dense<0.000000e+00> : vector<64x192xf32>
    %26 = tpu.matmul %24, %25, %cst_19 {dimension_numbers = #tpu.dot_dimension_numbers<[1], [0], [0], [1], [0, 0, 1, 1], [], []>} : vector<64x32xf32>, vector<32x192xf32>, vector<64x192xf32> -> vector<64x192xf32>
    %c0_20 = arith.constant 0 : index
    %c0_21 = arith.constant 0 : index
    %27 = vector.load %arg1[%c0_20, %c0_21] : memref<64x32xf32, #tpu.memory_space<vmem>>, vector<64x32xf32>
    %c0_22 = arith.constant 0 : index
    %c0_23 = arith.constant 0 : index
    %28 = vector.load %arg4[%c0_22, %c0_23] : memref<32x192xf32, #tpu.memory_space<vmem>>, vector<32x192xf32>
    %cst_24 = arith.constant dense<0.000000e+00> : vector<64x192xf32>
    %29 = tpu.matmul %27, %28, %cst_24 {dimension_numbers = #tpu.dot_dimension_numbers<[1], [0], [0], [1], [0, 0, 1, 1], [], []>} : vector<64x32xf32>, vector<32x192xf32>, vector<64x192xf32> -> vector<64x192xf32>
    %30 = arith.addf %26, %29 : vector<64x192xf32>
    %c0_25 = arith.constant 0 : index
    %c0_26 = arith.constant 0 : index
    %c0_27 = arith.constant 0 : index
    %31 = vector.load %arg8[%c0_25, %c0_26, %c0_27] : memref<2x1x192xf32, #tpu.memory_space<vmem>>, vector<1x1x192xf32>
    %32 = vector.shape_cast %31 : vector<1x1x192xf32> to vector<1x192xf32>
    %33 = vector.broadcast %32 : vector<1x192xf32> to vector<64x192xf32>
    %34 = arith.addf %30, %33 : vector<64x192xf32>
    %c0_28 = arith.constant 0 : index
    %c0_29 = arith.constant 0 : index
    %35 = vector.load %arg14[%c0_28, %c0_29] : memref<64x192xf32, #tpu.memory_space<vmem>>, vector<64x192xf32>
    tpu.vector_store %arg14[%c0_28, %c0_29], %34 {strides = array<i32>} : memref<64x192xf32, #tpu.memory_space<vmem>>, vector<64x192xf32>,
    %c0_30 = arith.constant 0 : index
    %c0_31 = arith.constant 0 : index
    %c0_32 = arith.constant 0 : index
    %36 = vector.load %arg7[%c0_30, %c0_31, %c0_32] : memref<2x64x192xf32, #tpu.memory_space<vmem>>, vector<1x64x192xf32>
    %37 = vector.shape_cast %36 : vector<1x64x192xf32> to vector<64x192xf32>
    %c0_33 = arith.constant 0 : index
    %c0_34 = arith.constant 0 : index
    %c0_35 = arith.constant 0 : index
    %38 = vector.load %arg9[%c0_33, %c0_34, %c0_35] : memref<2x1x64xf32, #tpu.memory_space<vmem>>, vector<1x1x64xf32>
    %39 = vector.shape_cast %38 : vector<1x1x64xf32> to vector<1x64xf32>
    %40 = vector.shape_cast %39 : vector<1x64xf32> to vector<1x64xf32>
    %41 = vector.broadcast %40 : vector<1x64xf32> to vector<8x64xf32>
    %cst_36 = arith.constant 0.000000e+00 : f32
    %42 = vector.broadcast %cst_36 : f32 to vector<8x64xf32>
    %c0_37 = arith.constant 0 : index
    %c0_38 = arith.constant 0 : index
    %43 = vector.load %arg14[%c0_37, %c0_38] : memref<64x192xf32, #tpu.memory_space<vmem>>, vector<8x192xf32>
    %cst_39 = arith.constant dense<0.000000e+00> : vector<8x192xf32>
    %44 = tpu.matmul %42, %37, %cst_39 {dimension_numbers = #tpu.dot_dimension_numbers<[1], [0], [0], [1], [0, 0, 1, 1], [], []>} : vector<8x64xf32>, vector<64x192xf32>, vector<8x192xf32> -> vector<8x192xf32>
    %45 = vector.extract_strided_slice %43 {offsets = [0, 0], sizes = [8, 128], strides = [1, 1]} : vector<8x192xf32> to vector<8x128xf32>
    %46 = vector.extract_strided_slice %44 {offsets = [0, 0], sizes = [8, 128], strides = [1, 1]} : vector<8x192xf32> to vector<8x128xf32>
    %47 = arith.addf %45, %46 : vector<8x128xf32>
    %48 = arith.negf %47 : vector<8x128xf32>
    %49 = math.exp %48 : vector<8x128xf32>
    %cst_40 = arith.constant 1.000000e+00 : f32
    %50 = vector.broadcast %cst_40 : f32 to vector<8x128xf32>
    %51 = arith.addf %50, %49 : vector<8x128xf32>
    %52 = arith.divf %50, %51 : vector<8x128xf32>
    %53 = vector.extract_strided_slice %52 {offsets = [0, 0], sizes = [8, 64], strides = [1, 1]} : vector<8x128xf32> to vector<8x64xf32>
    %54 = vector.extract_strided_slice %52 {offsets = [0, 64], sizes = [8, 64], strides = [1, 1]} : vector<8x128xf32> to vector<8x64xf32>
    %55 = vector.extract_strided_slice %43 {offsets = [0, 128], sizes = [8, 64], strides = [1, 1]} : vector<8x192xf32> to vector<8x64xf32>
    %56 = vector.extract_strided_slice %44 {offsets = [0, 128], sizes = [8, 64], strides = [1, 1]} : vector<8x192xf32> to vector<8x64xf32>
    %57 = arith.addf %56, %41 : vector<8x64xf32>
    %58 = arith.mulf %53, %57 : vector<8x64xf32>
    %59 = arith.addf %55, %58 : vector<8x64xf32>
    %60 = math.tanh %59 : vector<8x64xf32>
    %cst_41 = arith.constant 1.000000e+00 : f32
    %61 = vector.broadcast %cst_41 : f32 to vector<8x64xf32>
    %62 = arith.subf %61, %54 : vector<8x64xf32>
    %63 = arith.mulf %62, %60 : vector<8x64xf32>
    %64 = arith.mulf %54, %42 : vector<8x64xf32>
    %65 = arith.addf %63, %64 : vector<8x64xf32>
    %66 = arith.select %2, %65, %42 : vector<8x64xi1>, vector<8x64xf32>
    %c0_42 = arith.constant 0 : index
    %c0_43 = arith.constant 0 : index
    %67 = vector.load %arg12[%c0_42, %c0_43] : memref<64x64xf32, #tpu.memory_space<vmem>>, vector<8x64xf32>
    tpu.vector_store %arg12[%c0_42, %c0_43], %66 {strides = array<i32>} : memref<64x64xf32, #tpu.memory_space<vmem>>, vector<8x64xf32>,
    %c8_44 = arith.constant 8 : index
    %c0_45 = arith.constant 0 : index
    %68 = vector.load %arg14[%c8_44, %c0_45] : memref<64x192xf32, #tpu.memory_space<vmem>>, vector<8x192xf32>
    %cst_46 = arith.constant dense<0.000000e+00> : vector<8x192xf32>
    %69 = tpu.matmul %66, %37, %cst_46 {dimension_numbers = #tpu.dot_dimension_numbers<[1], [0], [0], [1], [0, 0, 1, 1], [], []>} : vector<8x64xf32>, vector<64x192xf32>, vector<8x192xf32> -> vector<8x192xf32>
    %70 = vector.extract_strided_slice %68 {offsets = [0, 0], sizes = [8, 128], strides = [1, 1]} : vector<8x192xf32> to vector<8x128xf32>
    %71 = vector.extract_strided_slice %69 {offsets = [0, 0], sizes = [8, 128], strides = [1, 1]} : vector<8x192xf32> to vector<8x128xf32>
    %72 = arith.addf %70, %71 : vector<8x128xf32>
    %73 = arith.negf %72 : vector<8x128xf32>
    %74 = math.exp %73 : vector<8x128xf32>
    %cst_47 = arith.constant 1.000000e+00 : f32
    %75 = vector.broadcast %cst_47 : f32 to vector<8x128xf32>
    %76 = arith.addf %75, %74 : vector<8x128xf32>
    %77 = arith.divf %75, %76 : vector<8x128xf32>
    %78 = vector.extract_strided_slice %77 {offsets = [0, 0], sizes = [8, 64], strides = [1, 1]} : vector<8x128xf32> to vector<8x64xf32>
    %79 = vector.extract_strided_slice %77 {offsets = [0, 64], sizes = [8, 64], strides = [1, 1]} : vector<8x128xf32> to vector<8x64xf32>
    %80 = vector.extract_strided_slice %68 {offsets = [0, 128], sizes = [8, 64], strides = [1, 1]} : vector<8x192xf32> to vector<8x64xf32>
    %81 = vector.extract_strided_slice %69 {offsets = [0, 128], sizes = [8, 64], strides = [1, 1]} : vector<8x192xf32> to vector<8x64xf32>
    %82 = arith.addf %81, %41 : vector<8x64xf32>
    %83 = arith.mulf %78, %82 : vector<8x64xf32>
    %84 = arith.addf %80, %83 : vector<8x64xf32>
    %85 = math.tanh %84 : vector<8x64xf32>
    %cst_48 = arith.constant 1.000000e+00 : f32
    %86 = vector.broadcast %cst_48 : f32 to vector<8x64xf32>
    %87 = arith.subf %86, %79 : vector<8x64xf32>
    %88 = arith.mulf %87, %85 : vector<8x64xf32>
    %89 = arith.mulf %79, %66 : vector<8x64xf32>
    %90 = arith.addf %88, %89 : vector<8x64xf32>
    %91 = arith.select %5, %90, %66 : vector<8x64xi1>, vector<8x64xf32>
    %c8_49 = arith.constant 8 : index
    %c0_50 = arith.constant 0 : index
    %92 = vector.load %arg12[%c8_49, %c0_50] : memref<64x64xf32, #tpu.memory_space<vmem>>, vector<8x64xf32>
    tpu.vector_store %arg12[%c8_49, %c0_50], %91 {strides = array<i32>} : memref<64x64xf32, #tpu.memory_space<vmem>>, vector<8x64xf32>,
    %c16_51 = arith.constant 16 : index
    %c0_52 = arith.constant 0 : index
    %93 = vector.load %arg14[%c16_51, %c0_52] : memref<64x192xf32, #tpu.memory_space<vmem>>, vector<8x192xf32>
    %cst_53 = arith.constant dense<0.000000e+00> : vector<8x192xf32>
    %94 = tpu.matmul %91, %37, %cst_53 {dimension_numbers = #tpu.dot_dimension_numbers<[1], [0], [0], [1], [0, 0, 1, 1], [], []>} : vector<8x64xf32>, vector<64x192xf32>, vector<8x192xf32> -> vector<8x192xf32>
    %95 = vector.extract_strided_slice %93 {offsets = [0, 0], sizes = [8, 128], strides = [1, 1]} : vector<8x192xf32> to vector<8x128xf32>
    %96 = vector.extract_strided_slice %94 {offsets = [0, 0], sizes = [8, 128], strides = [1, 1]} : vector<8x192xf32> to vector<8x128xf32>
    %97 = arith.addf %95, %96 : vector<8x128xf32>
    %98 = arith.negf %97 : vector<8x128xf32>
    %99 = math.exp %98 : vector<8x128xf32>
    %cst_54 = arith.constant 1.000000e+00 : f32
    %100 = vector.broadcast %cst_54 : f32 to vector<8x128xf32>
    %101 = arith.addf %100, %99 : vector<8x128xf32>
    %102 = arith.divf %100, %101 : vector<8x128xf32>
    %103 = vector.extract_strided_slice %102 {offsets = [0, 0], sizes = [8, 64], strides = [1, 1]} : vector<8x128xf32> to vector<8x64xf32>
    %104 = vector.extract_strided_slice %102 {offsets = [0, 64], sizes = [8, 64], strides = [1, 1]} : vector<8x128xf32> to vector<8x64xf32>
    %105 = vector.extract_strided_slice %93 {offsets = [0, 128], sizes = [8, 64], strides = [1, 1]} : vector<8x192xf32> to vector<8x64xf32>
    %106 = vector.extract_strided_slice %94 {offsets = [0, 128], sizes = [8, 64], strides = [1, 1]} : vector<8x192xf32> to vector<8x64xf32>
    %107 = arith.addf %106, %41 : vector<8x64xf32>
    %108 = arith.mulf %103, %107 : vector<8x64xf32>
    %109 = arith.addf %105, %108 : vector<8x64xf32>
    %110 = math.tanh %109 : vector<8x64xf32>
    %cst_55 = arith.constant 1.000000e+00 : f32
    %111 = vector.broadcast %cst_55 : f32 to vector<8x64xf32>
    %112 = arith.subf %111, %104 : vector<8x64xf32>
    %113 = arith.mulf %112, %110 : vector<8x64xf32>
    %114 = arith.mulf %104, %91 : vector<8x64xf32>
    %115 = arith.addf %113, %114 : vector<8x64xf32>
    %116 = arith.select %8, %115, %91 : vector<8x64xi1>, vector<8x64xf32>
    %c16_56 = arith.constant 16 : index
    %c0_57 = arith.constant 0 : index
    %117 = vector.load %arg12[%c16_56, %c0_57] : memref<64x64xf32, #tpu.memory_space<vmem>>, vector<8x64xf32>
    tpu.vector_store %arg12[%c16_56, %c0_57], %116 {strides = array<i32>} : memref<64x64xf32, #tpu.memory_space<vmem>>, vector<8x64xf32>,
    %c24_58 = arith.constant 24 : index
    %c0_59 = arith.constant 0 : index
    %118 = vector.load %arg14[%c24_58, %c0_59] : memref<64x192xf32, #tpu.memory_space<vmem>>, vector<8x192xf32>
    %cst_60 = arith.constant dense<0.000000e+00> : vector<8x192xf32>
    %119 = tpu.matmul %116, %37, %cst_60 {dimension_numbers = #tpu.dot_dimension_numbers<[1], [0], [0], [1], [0, 0, 1, 1], [], []>} : vector<8x64xf32>, vector<64x192xf32>, vector<8x192xf32> -> vector<8x192xf32>
    %120 = vector.extract_strided_slice %118 {offsets = [0, 0], sizes = [8, 128], strides = [1, 1]} : vector<8x192xf32> to vector<8x128xf32>
    %121 = vector.extract_strided_slice %119 {offsets = [0, 0], sizes = [8, 128], strides = [1, 1]} : vector<8x192xf32> to vector<8x128xf32>
    %122 = arith.addf %120, %121 : vector<8x128xf32>
    %123 = arith.negf %122 : vector<8x128xf32>
    %124 = math.exp %123 : vector<8x128xf32>
    %cst_61 = arith.constant 1.000000e+00 : f32
    %125 = vector.broadcast %cst_61 : f32 to vector<8x128xf32>
    %126 = arith.addf %125, %124 : vector<8x128xf32>
    %127 = arith.divf %125, %126 : vector<8x128xf32>
    %128 = vector.extract_strided_slice %127 {offsets = [0, 0], sizes = [8, 64], strides = [1, 1]} : vector<8x128xf32> to vector<8x64xf32>
    %129 = vector.extract_strided_slice %127 {offsets = [0, 64], sizes = [8, 64], strides = [1, 1]} : vector<8x128xf32> to vector<8x64xf32>
    %130 = vector.extract_strided_slice %118 {offsets = [0, 128], sizes = [8, 64], strides = [1, 1]} : vector<8x192xf32> to vector<8x64xf32>
    %131 = vector.extract_strided_slice %119 {offsets = [0, 128], sizes = [8, 64], strides = [1, 1]} : vector<8x192xf32> to vector<8x64xf32>
    %132 = arith.addf %131, %41 : vector<8x64xf32>
    %133 = arith.mulf %128, %132 : vector<8x64xf32>
    %134 = arith.addf %130, %133 : vector<8x64xf32>
    %135 = math.tanh %134 : vector<8x64xf32>
    %cst_62 = arith.constant 1.000000e+00 : f32
    %136 = vector.broadcast %cst_62 : f32 to vector<8x64xf32>
    %137 = arith.subf %136, %129 : vector<8x64xf32>
    %138 = arith.mulf %137, %135 : vector<8x64xf32>
    %139 = arith.mulf %129, %116 : vector<8x64xf32>
    %140 = arith.addf %138, %139 : vector<8x64xf32>
    %141 = arith.select %11, %140, %116 : vector<8x64xi1>, vector<8x64xf32>
    %c24_63 = arith.constant 24 : index
    %c0_64 = arith.constant 0 : index
    %142 = vector.load %arg12[%c24_63, %c0_64] : memref<64x64xf32, #tpu.memory_space<vmem>>, vector<8x64xf32>
    tpu.vector_store %arg12[%c24_63, %c0_64], %141 {strides = array<i32>} : memref<64x64xf32, #tpu.memory_space<vmem>>, vector<8x64xf32>,
    %c32_65 = arith.constant 32 : index
    %c0_66 = arith.constant 0 : index
    %143 = vector.load %arg14[%c32_65, %c0_66] : memref<64x192xf32, #tpu.memory_space<vmem>>, vector<8x192xf32>
    %cst_67 = arith.constant dense<0.000000e+00> : vector<8x192xf32>
    %144 = tpu.matmul %141, %37, %cst_67 {dimension_numbers = #tpu.dot_dimension_numbers<[1], [0], [0], [1], [0, 0, 1, 1], [], []>} : vector<8x64xf32>, vector<64x192xf32>, vector<8x192xf32> -> vector<8x192xf32>
    %145 = vector.extract_strided_slice %143 {offsets = [0, 0], sizes = [8, 128], strides = [1, 1]} : vector<8x192xf32> to vector<8x128xf32>
    %146 = vector.extract_strided_slice %144 {offsets = [0, 0], sizes = [8, 128], strides = [1, 1]} : vector<8x192xf32> to vector<8x128xf32>
    %147 = arith.addf %145, %146 : vector<8x128xf32>
    %148 = arith.negf %147 : vector<8x128xf32>
    %149 = math.exp %148 : vector<8x128xf32>
    %cst_68 = arith.constant 1.000000e+00 : f32
    %150 = vector.broadcast %cst_68 : f32 to vector<8x128xf32>
    %151 = arith.addf %150, %149 : vector<8x128xf32>
    %152 = arith.divf %150, %151 : vector<8x128xf32>
    %153 = vector.extract_strided_slice %152 {offsets = [0, 0], sizes = [8, 64], strides = [1, 1]} : vector<8x128xf32> to vector<8x64xf32>
    %154 = vector.extract_strided_slice %152 {offsets = [0, 64], sizes = [8, 64], strides = [1, 1]} : vector<8x128xf32> to vector<8x64xf32>
    %155 = vector.extract_strided_slice %143 {offsets = [0, 128], sizes = [8, 64], strides = [1, 1]} : vector<8x192xf32> to vector<8x64xf32>
    %156 = vector.extract_strided_slice %144 {offsets = [0, 128], sizes = [8, 64], strides = [1, 1]} : vector<8x192xf32> to vector<8x64xf32>
    %157 = arith.addf %156, %41 : vector<8x64xf32>
    %158 = arith.mulf %153, %157 : vector<8x64xf32>
    %159 = arith.addf %155, %158 : vector<8x64xf32>
    %160 = math.tanh %159 : vector<8x64xf32>
    %cst_69 = arith.constant 1.000000e+00 : f32
    %161 = vector.broadcast %cst_69 : f32 to vector<8x64xf32>
    %162 = arith.subf %161, %154 : vector<8x64xf32>
    %163 = arith.mulf %162, %160 : vector<8x64xf32>
    %164 = arith.mulf %154, %141 : vector<8x64xf32>
    %165 = arith.addf %163, %164 : vector<8x64xf32>
    %166 = arith.select %14, %165, %141 : vector<8x64xi1>, vector<8x64xf32>
    %c32_70 = arith.constant 32 : index
    %c0_71 = arith.constant 0 : index
    %167 = vector.load %arg12[%c32_70, %c0_71] : memref<64x64xf32, #tpu.memory_space<vmem>>, vector<8x64xf32>
    tpu.vector_store %arg12[%c32_70, %c0_71], %166 {strides = array<i32>} : memref<64x64xf32, #tpu.memory_space<vmem>>, vector<8x64xf32>,
    %c40_72 = arith.constant 40 : index
    %c0_73 = arith.constant 0 : index
    %168 = vector.load %arg14[%c40_72, %c0_73] : memref<64x192xf32, #tpu.memory_space<vmem>>, vector<8x192xf32>
    %cst_74 = arith.constant dense<0.000000e+00> : vector<8x192xf32>
    %169 = tpu.matmul %166, %37, %cst_74 {dimension_numbers = #tpu.dot_dimension_numbers<[1], [0], [0], [1], [0, 0, 1, 1], [], []>} : vector<8x64xf32>, vector<64x192xf32>, vector<8x192xf32> -> vector<8x192xf32>
    %170 = vector.extract_strided_slice %168 {offsets = [0, 0], sizes = [8, 128], strides = [1, 1]} : vector<8x192xf32> to vector<8x128xf32>
    %171 = vector.extract_strided_slice %169 {offsets = [0, 0], sizes = [8, 128], strides = [1, 1]} : vector<8x192xf32> to vector<8x128xf32>
    %172 = arith.addf %170, %171 : vector<8x128xf32>
    %173 = arith.negf %172 : vector<8x128xf32>
    %174 = math.exp %173 : vector<8x128xf32>
    %cst_75 = arith.constant 1.000000e+00 : f32
    %175 = vector.broadcast %cst_75 : f32 to vector<8x128xf32>
    %176 = arith.addf %175, %174 : vector<8x128xf32>
    %177 = arith.divf %175, %176 : vector<8x128xf32>
    %178 = vector.extract_strided_slice %177 {offsets = [0, 0], sizes = [8, 64], strides = [1, 1]} : vector<8x128xf32> to vector<8x64xf32>
    %179 = vector.extract_strided_slice %177 {offsets = [0, 64], sizes = [8, 64], strides = [1, 1]} : vector<8x128xf32> to vector<8x64xf32>
    %180 = vector.extract_strided_slice %168 {offsets = [0, 128], sizes = [8, 64], strides = [1, 1]} : vector<8x192xf32> to vector<8x64xf32>
    %181 = vector.extract_strided_slice %169 {offsets = [0, 128], sizes = [8, 64], strides = [1, 1]} : vector<8x192xf32> to vector<8x64xf32>
    %182 = arith.addf %181, %41 : vector<8x64xf32>
    %183 = arith.mulf %178, %182 : vector<8x64xf32>
    %184 = arith.addf %180, %183 : vector<8x64xf32>
    %185 = math.tanh %184 : vector<8x64xf32>
    %cst_76 = arith.constant 1.000000e+00 : f32
    %186 = vector.broadcast %cst_76 : f32 to vector<8x64xf32>
    %187 = arith.subf %186, %179 : vector<8x64xf32>
    %188 = arith.mulf %187, %185 : vector<8x64xf32>
    %189 = arith.mulf %179, %166 : vector<8x64xf32>
    %190 = arith.addf %188, %189 : vector<8x64xf32>
    %191 = arith.select %17, %190, %166 : vector<8x64xi1>, vector<8x64xf32>
    %c40_77 = arith.constant 40 : index
    %c0_78 = arith.constant 0 : index
    %192 = vector.load %arg12[%c40_77, %c0_78] : memref<64x64xf32, #tpu.memory_space<vmem>>, vector<8x64xf32>
    tpu.vector_store %arg12[%c40_77, %c0_78], %191 {strides = array<i32>} : memref<64x64xf32, #tpu.memory_space<vmem>>, vector<8x64xf32>,
    %c48_79 = arith.constant 48 : index
    %c0_80 = arith.constant 0 : index
    %193 = vector.load %arg14[%c48_79, %c0_80] : memref<64x192xf32, #tpu.memory_space<vmem>>, vector<8x192xf32>
    %cst_81 = arith.constant dense<0.000000e+00> : vector<8x192xf32>
    %194 = tpu.matmul %191, %37, %cst_81 {dimension_numbers = #tpu.dot_dimension_numbers<[1], [0], [0], [1], [0, 0, 1, 1], [], []>} : vector<8x64xf32>, vector<64x192xf32>, vector<8x192xf32> -> vector<8x192xf32>
    %195 = vector.extract_strided_slice %193 {offsets = [0, 0], sizes = [8, 128], strides = [1, 1]} : vector<8x192xf32> to vector<8x128xf32>
    %196 = vector.extract_strided_slice %194 {offsets = [0, 0], sizes = [8, 128], strides = [1, 1]} : vector<8x192xf32> to vector<8x128xf32>
    %197 = arith.addf %195, %196 : vector<8x128xf32>
    %198 = arith.negf %197 : vector<8x128xf32>
    %199 = math.exp %198 : vector<8x128xf32>
    %cst_82 = arith.constant 1.000000e+00 : f32
    %200 = vector.broadcast %cst_82 : f32 to vector<8x128xf32>
    %201 = arith.addf %200, %199 : vector<8x128xf32>
    %202 = arith.divf %200, %201 : vector<8x128xf32>
    %203 = vector.extract_strided_slice %202 {offsets = [0, 0], sizes = [8, 64], strides = [1, 1]} : vector<8x128xf32> to vector<8x64xf32>
    %204 = vector.extract_strided_slice %202 {offsets = [0, 64], sizes = [8, 64], strides = [1, 1]} : vector<8x128xf32> to vector<8x64xf32>
    %205 = vector.extract_strided_slice %193 {offsets = [0, 128], sizes = [8, 64], strides = [1, 1]} : vector<8x192xf32> to vector<8x64xf32>
    %206 = vector.extract_strided_slice %194 {offsets = [0, 128], sizes = [8, 64], strides = [1, 1]} : vector<8x192xf32> to vector<8x64xf32>
    %207 = arith.addf %206, %41 : vector<8x64xf32>
    %208 = arith.mulf %203, %207 : vector<8x64xf32>
    %209 = arith.addf %205, %208 : vector<8x64xf32>
    %210 = math.tanh %209 : vector<8x64xf32>
    %cst_83 = arith.constant 1.000000e+00 : f32
    %211 = vector.broadcast %cst_83 : f32 to vector<8x64xf32>
    %212 = arith.subf %211, %204 : vector<8x64xf32>
    %213 = arith.mulf %212, %210 : vector<8x64xf32>
    %214 = arith.mulf %204, %191 : vector<8x64xf32>
    %215 = arith.addf %213, %214 : vector<8x64xf32>
    %216 = arith.select %20, %215, %191 : vector<8x64xi1>, vector<8x64xf32>
    %c48_84 = arith.constant 48 : index
    %c0_85 = arith.constant 0 : index
    %217 = vector.load %arg12[%c48_84, %c0_85] : memref<64x64xf32, #tpu.memory_space<vmem>>, vector<8x64xf32>
    tpu.vector_store %arg12[%c48_84, %c0_85], %216 {strides = array<i32>} : memref<64x64xf32, #tpu.memory_space<vmem>>, vector<8x64xf32>,
    %c56_86 = arith.constant 56 : index
    %c0_87 = arith.constant 0 : index
    %218 = vector.load %arg14[%c56_86, %c0_87] : memref<64x192xf32, #tpu.memory_space<vmem>>, vector<8x192xf32>
    %cst_88 = arith.constant dense<0.000000e+00> : vector<8x192xf32>
    %219 = tpu.matmul %216, %37, %cst_88 {dimension_numbers = #tpu.dot_dimension_numbers<[1], [0], [0], [1], [0, 0, 1, 1], [], []>} : vector<8x64xf32>, vector<64x192xf32>, vector<8x192xf32> -> vector<8x192xf32>
    %220 = vector.extract_strided_slice %218 {offsets = [0, 0], sizes = [8, 128], strides = [1, 1]} : vector<8x192xf32> to vector<8x128xf32>
    %221 = vector.extract_strided_slice %219 {offsets = [0, 0], sizes = [8, 128], strides = [1, 1]} : vector<8x192xf32> to vector<8x128xf32>
    %222 = arith.addf %220, %221 : vector<8x128xf32>
    %223 = arith.negf %222 : vector<8x128xf32>
    %224 = math.exp %223 : vector<8x128xf32>
    %cst_89 = arith.constant 1.000000e+00 : f32
    %225 = vector.broadcast %cst_89 : f32 to vector<8x128xf32>
    %226 = arith.addf %225, %224 : vector<8x128xf32>
    %227 = arith.divf %225, %226 : vector<8x128xf32>
    %228 = vector.extract_strided_slice %227 {offsets = [0, 0], sizes = [8, 64], strides = [1, 1]} : vector<8x128xf32> to vector<8x64xf32>
    %229 = vector.extract_strided_slice %227 {offsets = [0, 64], sizes = [8, 64], strides = [1, 1]} : vector<8x128xf32> to vector<8x64xf32>
    %230 = vector.extract_strided_slice %218 {offsets = [0, 128], sizes = [8, 64], strides = [1, 1]} : vector<8x192xf32> to vector<8x64xf32>
    %231 = vector.extract_strided_slice %219 {offsets = [0, 128], sizes = [8, 64], strides = [1, 1]} : vector<8x192xf32> to vector<8x64xf32>
    %232 = arith.addf %231, %41 : vector<8x64xf32>
    %233 = arith.mulf %228, %232 : vector<8x64xf32>
    %234 = arith.addf %230, %233 : vector<8x64xf32>
    %235 = math.tanh %234 : vector<8x64xf32>
    %cst_90 = arith.constant 1.000000e+00 : f32
    %236 = vector.broadcast %cst_90 : f32 to vector<8x64xf32>
    %237 = arith.subf %236, %229 : vector<8x64xf32>
    %238 = arith.mulf %237, %235 : vector<8x64xf32>
    %239 = arith.mulf %229, %216 : vector<8x64xf32>
    %240 = arith.addf %238, %239 : vector<8x64xf32>
    %241 = arith.select %23, %240, %216 : vector<8x64xi1>, vector<8x64xf32>
    %c56_91 = arith.constant 56 : index
    %c0_92 = arith.constant 0 : index
    %242 = vector.load %arg12[%c56_91, %c0_92] : memref<64x64xf32, #tpu.memory_space<vmem>>, vector<8x64xf32>
    tpu.vector_store %arg12[%c56_91, %c0_92], %241 {strides = array<i32>} : memref<64x64xf32, #tpu.memory_space<vmem>>, vector<8x64xf32>,
    %243 = vector.extract_strided_slice %241 {offsets = [0, 0], sizes = [8, 32], strides = [1, 1]} : vector<8x64xf32> to vector<8x32xf32>
    %244 = vector.extract_strided_slice %241 {offsets = [0, 32], sizes = [8, 32], strides = [1, 1]} : vector<8x64xf32> to vector<8x32xf32>
    %245 = arith.addf %243, %244 : vector<8x32xf32>
    %c0_93 = arith.constant 0 : index
    %c0_94 = arith.constant 0 : index
    %c0_95 = arith.constant 0 : index
    %246 = vector.load %arg11[%c0_93, %c0_94, %c0_95] : memref<2x8x32xf32, #tpu.memory_space<vmem>>, vector<1x8x32xf32>
    %247 = vector.shape_cast %246 : vector<1x8x32xf32> to vector<8x32xf32>
    %248 = vector.shape_cast %245 : vector<8x32xf32> to vector<1x8x32xf32>
    tpu.vector_store %arg11[%c0_93, %c0_94, %c0_95], %248 {strides = array<i32>} : memref<2x8x32xf32, #tpu.memory_space<vmem>>, vector<1x8x32xf32>,
    %c56_96 = arith.constant 56 : index
    %c0_97 = arith.constant 0 : index
    %249 = vector.load %arg12[%c56_96, %c0_97] : memref<64x64xf32, #tpu.memory_space<vmem>>, vector<8x64xf32>
    %c0_98 = arith.constant 0 : index
    %c0_99 = arith.constant 0 : index
    %250 = vector.load %arg13[%c0_98, %c0_99] : memref<64x64xf32, #tpu.memory_space<vmem>>, vector<8x64xf32>
    tpu.vector_store %arg13[%c0_98, %c0_99], %249 {strides = array<i32>} : memref<64x64xf32, #tpu.memory_space<vmem>>, vector<8x64xf32>,
    %c48_100 = arith.constant 48 : index
    %c0_101 = arith.constant 0 : index
    %251 = vector.load %arg12[%c48_100, %c0_101] : memref<64x64xf32, #tpu.memory_space<vmem>>, vector<8x64xf32>
    %c8_102 = arith.constant 8 : index
    %c0_103 = arith.constant 0 : index
    %252 = vector.load %arg13[%c8_102, %c0_103] : memref<64x64xf32, #tpu.memory_space<vmem>>, vector<8x64xf32>
    tpu.vector_store %arg13[%c8_102, %c0_103], %251 {strides = array<i32>} : memref<64x64xf32, #tpu.memory_space<vmem>>, vector<8x64xf32>,
    %c40_104 = arith.constant 40 : index
    %c0_105 = arith.constant 0 : index
    %253 = vector.load %arg12[%c40_104, %c0_105] : memref<64x64xf32, #tpu.memory_space<vmem>>, vector<8x64xf32>
    %c16_106 = arith.constant 16 : index
    %c0_107 = arith.constant 0 : index
    %254 = vector.load %arg13[%c16_106, %c0_107] : memref<64x64xf32, #tpu.memory_space<vmem>>, vector<8x64xf32>
    tpu.vector_store %arg13[%c16_106, %c0_107], %253 {strides = array<i32>} : memref<64x64xf32, #tpu.memory_space<vmem>>, vector<8x64xf32>,
    %c32_108 = arith.constant 32 : index
    %c0_109 = arith.constant 0 : index
    %255 = vector.load %arg12[%c32_108, %c0_109] : memref<64x64xf32, #tpu.memory_space<vmem>>, vector<8x64xf32>
    %c24_110 = arith.constant 24 : index
    %c0_111 = arith.constant 0 : index
    %256 = vector.load %arg13[%c24_110, %c0_111] : memref<64x64xf32, #tpu.memory_space<vmem>>, vector<8x64xf32>
    tpu.vector_store %arg13[%c24_110, %c0_111], %255 {strides = array<i32>} : memref<64x64xf32, #tpu.memory_space<vmem>>, vector<8x64xf32>,
    %c24_112 = arith.constant 24 : index
    %c0_113 = arith.constant 0 : index
    %257 = vector.load %arg12[%c24_112, %c0_113] : memref<64x64xf32, #tpu.memory_space<vmem>>, vector<8x64xf32>
    %c32_114 = arith.constant 32 : index
    %c0_115 = arith.constant 0 : index
    %258 = vector.load %arg13[%c32_114, %c0_115] : memref<64x64xf32, #tpu.memory_space<vmem>>, vector<8x64xf32>
    tpu.vector_store %arg13[%c32_114, %c0_115], %257 {strides = array<i32>} : memref<64x64xf32, #tpu.memory_space<vmem>>, vector<8x64xf32>,
    %c16_116 = arith.constant 16 : index
    %c0_117 = arith.constant 0 : index
    %259 = vector.load %arg12[%c16_116, %c0_117] : memref<64x64xf32, #tpu.memory_space<vmem>>, vector<8x64xf32>
    %c40_118 = arith.constant 40 : index
    %c0_119 = arith.constant 0 : index
    %260 = vector.load %arg13[%c40_118, %c0_119] : memref<64x64xf32, #tpu.memory_space<vmem>>, vector<8x64xf32>
    tpu.vector_store %arg13[%c40_118, %c0_119], %259 {strides = array<i32>} : memref<64x64xf32, #tpu.memory_space<vmem>>, vector<8x64xf32>,
    %c8_120 = arith.constant 8 : index
    %c0_121 = arith.constant 0 : index
    %261 = vector.load %arg12[%c8_120, %c0_121] : memref<64x64xf32, #tpu.memory_space<vmem>>, vector<8x64xf32>
    %c48_122 = arith.constant 48 : index
    %c0_123 = arith.constant 0 : index
    %262 = vector.load %arg13[%c48_122, %c0_123] : memref<64x64xf32, #tpu.memory_space<vmem>>, vector<8x64xf32>
    tpu.vector_store %arg13[%c48_122, %c0_123], %261 {strides = array<i32>} : memref<64x64xf32, #tpu.memory_space<vmem>>, vector<8x64xf32>,
    %c0_124 = arith.constant 0 : index
    %c0_125 = arith.constant 0 : index
    %263 = vector.load %arg12[%c0_124, %c0_125] : memref<64x64xf32, #tpu.memory_space<vmem>>, vector<8x64xf32>
    %c56_126 = arith.constant 56 : index
    %c0_127 = arith.constant 0 : index
    %264 = vector.load %arg13[%c56_126, %c0_127] : memref<64x64xf32, #tpu.memory_space<vmem>>, vector<8x64xf32>
    tpu.vector_store %arg13[%c56_126, %c0_127], %263 {strides = array<i32>} : memref<64x64xf32, #tpu.memory_space<vmem>>, vector<8x64xf32>,
    %c0_128 = arith.constant 0 : index
    %c0_129 = arith.constant 0 : index
    %265 = vector.load %arg12[%c0_128, %c0_129] : memref<64x64xf32, #tpu.memory_space<vmem>>, vector<64x64xf32>
    %c0_130 = arith.constant 0 : index
    %c0_131 = arith.constant 0 : index
    %c0_132 = arith.constant 0 : index
    %266 = vector.load %arg5[%c0_130, %c0_131, %c0_132] : memref<1x64x192xf32, #tpu.memory_space<vmem>>, vector<1x64x192xf32>
    %267 = vector.shape_cast %266 : vector<1x64x192xf32> to vector<64x192xf32>
    %cst_133 = arith.constant dense<0.000000e+00> : vector<64x192xf32>
    %268 = tpu.matmul %265, %267, %cst_133 {dimension_numbers = #tpu.dot_dimension_numbers<[1], [0], [0], [1], [0, 0, 1, 1], [], []>} : vector<64x64xf32>, vector<64x192xf32>, vector<64x192xf32> -> vector<64x192xf32>
    %c0_134 = arith.constant 0 : index
    %c0_135 = arith.constant 0 : index
    %269 = vector.load %arg13[%c0_134, %c0_135] : memref<64x64xf32, #tpu.memory_space<vmem>>, vector<64x64xf32>
    %c0_136 = arith.constant 0 : index
    %c0_137 = arith.constant 0 : index
    %c0_138 = arith.constant 0 : index
    %270 = vector.load %arg6[%c0_136, %c0_137, %c0_138] : memref<1x64x192xf32, #tpu.memory_space<vmem>>, vector<1x64x192xf32>
    %271 = vector.shape_cast %270 : vector<1x64x192xf32> to vector<64x192xf32>
    %cst_139 = arith.constant dense<0.000000e+00> : vector<64x192xf32>
    %272 = tpu.matmul %269, %271, %cst_139 {dimension_numbers = #tpu.dot_dimension_numbers<[1], [0], [0], [1], [0, 0, 1, 1], [], []>} : vector<64x64xf32>, vector<64x192xf32>, vector<64x192xf32> -> vector<64x192xf32>
    %273 = arith.addf %268, %272 : vector<64x192xf32>
    %c1 = arith.constant 1 : index
    %c0_140 = arith.constant 0 : index
    %c0_141 = arith.constant 0 : index
    %274 = vector.load %arg8[%c1, %c0_140, %c0_141] : memref<2x1x192xf32, #tpu.memory_space<vmem>>, vector<1x1x192xf32>
    %275 = vector.shape_cast %274 : vector<1x1x192xf32> to vector<1x192xf32>
    %276 = vector.broadcast %275 : vector<1x192xf32> to vector<64x192xf32>
    %277 = arith.addf %273, %276 : vector<64x192xf32>
    %c0_142 = arith.constant 0 : index
    %c0_143 = arith.constant 0 : index
    %278 = vector.load %arg14[%c0_142, %c0_143] : memref<64x192xf32, #tpu.memory_space<vmem>>, vector<64x192xf32>
    tpu.vector_store %arg14[%c0_142, %c0_143], %277 {strides = array<i32>} : memref<64x192xf32, #tpu.memory_space<vmem>>, vector<64x192xf32>,
    %c1_144 = arith.constant 1 : index
    %c0_145 = arith.constant 0 : index
    %c0_146 = arith.constant 0 : index
    %279 = vector.load %arg7[%c1_144, %c0_145, %c0_146] : memref<2x64x192xf32, #tpu.memory_space<vmem>>, vector<1x64x192xf32>
    %280 = vector.shape_cast %279 : vector<1x64x192xf32> to vector<64x192xf32>
    %c1_147 = arith.constant 1 : index
    %c0_148 = arith.constant 0 : index
    %c0_149 = arith.constant 0 : index
    %281 = vector.load %arg9[%c1_147, %c0_148, %c0_149] : memref<2x1x64xf32, #tpu.memory_space<vmem>>, vector<1x1x64xf32>
    %282 = vector.shape_cast %281 : vector<1x1x64xf32> to vector<1x64xf32>
    %283 = vector.shape_cast %282 : vector<1x64xf32> to vector<1x64xf32>
    %284 = vector.broadcast %283 : vector<1x64xf32> to vector<8x64xf32>
    %cst_150 = arith.constant 0.000000e+00 : f32
    %285 = vector.broadcast %cst_150 : f32 to vector<8x64xf32>
    %c0_151 = arith.constant 0 : index
    %c0_152 = arith.constant 0 : index
    %286 = vector.load %arg14[%c0_151, %c0_152] : memref<64x192xf32, #tpu.memory_space<vmem>>, vector<8x192xf32>
    %cst_153 = arith.constant dense<0.000000e+00> : vector<8x192xf32>
    %287 = tpu.matmul %285, %280, %cst_153 {dimension_numbers = #tpu.dot_dimension_numbers<[1], [0], [0], [1], [0, 0, 1, 1], [], []>} : vector<8x64xf32>, vector<64x192xf32>, vector<8x192xf32> -> vector<8x192xf32>
    %288 = vector.extract_strided_slice %286 {offsets = [0, 0], sizes = [8, 128], strides = [1, 1]} : vector<8x192xf32> to vector<8x128xf32>
    %289 = vector.extract_strided_slice %287 {offsets = [0, 0], sizes = [8, 128], strides = [1, 1]} : vector<8x192xf32> to vector<8x128xf32>
    %290 = arith.addf %288, %289 : vector<8x128xf32>
    %291 = arith.negf %290 : vector<8x128xf32>
    %292 = math.exp %291 : vector<8x128xf32>
    %cst_154 = arith.constant 1.000000e+00 : f32
    %293 = vector.broadcast %cst_154 : f32 to vector<8x128xf32>
    %294 = arith.addf %293, %292 : vector<8x128xf32>
    %295 = arith.divf %293, %294 : vector<8x128xf32>
    %296 = vector.extract_strided_slice %295 {offsets = [0, 0], sizes = [8, 64], strides = [1, 1]} : vector<8x128xf32> to vector<8x64xf32>
    %297 = vector.extract_strided_slice %295 {offsets = [0, 64], sizes = [8, 64], strides = [1, 1]} : vector<8x128xf32> to vector<8x64xf32>
    %298 = vector.extract_strided_slice %286 {offsets = [0, 128], sizes = [8, 64], strides = [1, 1]} : vector<8x192xf32> to vector<8x64xf32>
    %299 = vector.extract_strided_slice %287 {offsets = [0, 128], sizes = [8, 64], strides = [1, 1]} : vector<8x192xf32> to vector<8x64xf32>
    %300 = arith.addf %299, %284 : vector<8x64xf32>
    %301 = arith.mulf %296, %300 : vector<8x64xf32>
    %302 = arith.addf %298, %301 : vector<8x64xf32>
    %303 = math.tanh %302 : vector<8x64xf32>
    %cst_155 = arith.constant 1.000000e+00 : f32
    %304 = vector.broadcast %cst_155 : f32 to vector<8x64xf32>
    %305 = arith.subf %304, %297 : vector<8x64xf32>
    %306 = arith.mulf %305, %303 : vector<8x64xf32>
    %307 = arith.mulf %297, %285 : vector<8x64xf32>
    %308 = arith.addf %306, %307 : vector<8x64xf32>
    %309 = arith.select %2, %308, %285 : vector<8x64xi1>, vector<8x64xf32>
    %c0_156 = arith.constant 0 : index
    %c0_157 = arith.constant 0 : index
    %310 = vector.load %arg10[%c0_156, %c0_157] : memref<64x64xf32, #tpu.memory_space<vmem>>, vector<8x64xf32>
    tpu.vector_store %arg10[%c0_156, %c0_157], %309 {strides = array<i32>} : memref<64x64xf32, #tpu.memory_space<vmem>>, vector<8x64xf32>,
    %c8_158 = arith.constant 8 : index
    %c0_159 = arith.constant 0 : index
    %311 = vector.load %arg14[%c8_158, %c0_159] : memref<64x192xf32, #tpu.memory_space<vmem>>, vector<8x192xf32>
    %cst_160 = arith.constant dense<0.000000e+00> : vector<8x192xf32>
    %312 = tpu.matmul %309, %280, %cst_160 {dimension_numbers = #tpu.dot_dimension_numbers<[1], [0], [0], [1], [0, 0, 1, 1], [], []>} : vector<8x64xf32>, vector<64x192xf32>, vector<8x192xf32> -> vector<8x192xf32>
    %313 = vector.extract_strided_slice %311 {offsets = [0, 0], sizes = [8, 128], strides = [1, 1]} : vector<8x192xf32> to vector<8x128xf32>
    %314 = vector.extract_strided_slice %312 {offsets = [0, 0], sizes = [8, 128], strides = [1, 1]} : vector<8x192xf32> to vector<8x128xf32>
    %315 = arith.addf %313, %314 : vector<8x128xf32>
    %316 = arith.negf %315 : vector<8x128xf32>
    %317 = math.exp %316 : vector<8x128xf32>
    %cst_161 = arith.constant 1.000000e+00 : f32
    %318 = vector.broadcast %cst_161 : f32 to vector<8x128xf32>
    %319 = arith.addf %318, %317 : vector<8x128xf32>
    %320 = arith.divf %318, %319 : vector<8x128xf32>
    %321 = vector.extract_strided_slice %320 {offsets = [0, 0], sizes = [8, 64], strides = [1, 1]} : vector<8x128xf32> to vector<8x64xf32>
    %322 = vector.extract_strided_slice %320 {offsets = [0, 64], sizes = [8, 64], strides = [1, 1]} : vector<8x128xf32> to vector<8x64xf32>
    %323 = vector.extract_strided_slice %311 {offsets = [0, 128], sizes = [8, 64], strides = [1, 1]} : vector<8x192xf32> to vector<8x64xf32>
    %324 = vector.extract_strided_slice %312 {offsets = [0, 128], sizes = [8, 64], strides = [1, 1]} : vector<8x192xf32> to vector<8x64xf32>
    %325 = arith.addf %324, %284 : vector<8x64xf32>
    %326 = arith.mulf %321, %325 : vector<8x64xf32>
    %327 = arith.addf %323, %326 : vector<8x64xf32>
    %328 = math.tanh %327 : vector<8x64xf32>
    %cst_162 = arith.constant 1.000000e+00 : f32
    %329 = vector.broadcast %cst_162 : f32 to vector<8x64xf32>
    %330 = arith.subf %329, %322 : vector<8x64xf32>
    %331 = arith.mulf %330, %328 : vector<8x64xf32>
    %332 = arith.mulf %322, %309 : vector<8x64xf32>
    %333 = arith.addf %331, %332 : vector<8x64xf32>
    %334 = arith.select %5, %333, %309 : vector<8x64xi1>, vector<8x64xf32>
    %c8_163 = arith.constant 8 : index
    %c0_164 = arith.constant 0 : index
    %335 = vector.load %arg10[%c8_163, %c0_164] : memref<64x64xf32, #tpu.memory_space<vmem>>, vector<8x64xf32>
    tpu.vector_store %arg10[%c8_163, %c0_164], %334 {strides = array<i32>} : memref<64x64xf32, #tpu.memory_space<vmem>>, vector<8x64xf32>,
    %c16_165 = arith.constant 16 : index
    %c0_166 = arith.constant 0 : index
    %336 = vector.load %arg14[%c16_165, %c0_166] : memref<64x192xf32, #tpu.memory_space<vmem>>, vector<8x192xf32>
    %cst_167 = arith.constant dense<0.000000e+00> : vector<8x192xf32>
    %337 = tpu.matmul %334, %280, %cst_167 {dimension_numbers = #tpu.dot_dimension_numbers<[1], [0], [0], [1], [0, 0, 1, 1], [], []>} : vector<8x64xf32>, vector<64x192xf32>, vector<8x192xf32> -> vector<8x192xf32>
    %338 = vector.extract_strided_slice %336 {offsets = [0, 0], sizes = [8, 128], strides = [1, 1]} : vector<8x192xf32> to vector<8x128xf32>
    %339 = vector.extract_strided_slice %337 {offsets = [0, 0], sizes = [8, 128], strides = [1, 1]} : vector<8x192xf32> to vector<8x128xf32>
    %340 = arith.addf %338, %339 : vector<8x128xf32>
    %341 = arith.negf %340 : vector<8x128xf32>
    %342 = math.exp %341 : vector<8x128xf32>
    %cst_168 = arith.constant 1.000000e+00 : f32
    %343 = vector.broadcast %cst_168 : f32 to vector<8x128xf32>
    %344 = arith.addf %343, %342 : vector<8x128xf32>
    %345 = arith.divf %343, %344 : vector<8x128xf32>
    %346 = vector.extract_strided_slice %345 {offsets = [0, 0], sizes = [8, 64], strides = [1, 1]} : vector<8x128xf32> to vector<8x64xf32>
    %347 = vector.extract_strided_slice %345 {offsets = [0, 64], sizes = [8, 64], strides = [1, 1]} : vector<8x128xf32> to vector<8x64xf32>
    %348 = vector.extract_strided_slice %336 {offsets = [0, 128], sizes = [8, 64], strides = [1, 1]} : vector<8x192xf32> to vector<8x64xf32>
    %349 = vector.extract_strided_slice %337 {offsets = [0, 128], sizes = [8, 64], strides = [1, 1]} : vector<8x192xf32> to vector<8x64xf32>
    %350 = arith.addf %349, %284 : vector<8x64xf32>
    %351 = arith.mulf %346, %350 : vector<8x64xf32>
    %352 = arith.addf %348, %351 : vector<8x64xf32>
    %353 = math.tanh %352 : vector<8x64xf32>
    %cst_169 = arith.constant 1.000000e+00 : f32
    %354 = vector.broadcast %cst_169 : f32 to vector<8x64xf32>
    %355 = arith.subf %354, %347 : vector<8x64xf32>
    %356 = arith.mulf %355, %353 : vector<8x64xf32>
    %357 = arith.mulf %347, %334 : vector<8x64xf32>
    %358 = arith.addf %356, %357 : vector<8x64xf32>
    %359 = arith.select %8, %358, %334 : vector<8x64xi1>, vector<8x64xf32>
    %c16_170 = arith.constant 16 : index
    %c0_171 = arith.constant 0 : index
    %360 = vector.load %arg10[%c16_170, %c0_171] : memref<64x64xf32, #tpu.memory_space<vmem>>, vector<8x64xf32>
    tpu.vector_store %arg10[%c16_170, %c0_171], %359 {strides = array<i32>} : memref<64x64xf32, #tpu.memory_space<vmem>>, vector<8x64xf32>,
    %c24_172 = arith.constant 24 : index
    %c0_173 = arith.constant 0 : index
    %361 = vector.load %arg14[%c24_172, %c0_173] : memref<64x192xf32, #tpu.memory_space<vmem>>, vector<8x192xf32>
    %cst_174 = arith.constant dense<0.000000e+00> : vector<8x192xf32>
    %362 = tpu.matmul %359, %280, %cst_174 {dimension_numbers = #tpu.dot_dimension_numbers<[1], [0], [0], [1], [0, 0, 1, 1], [], []>} : vector<8x64xf32>, vector<64x192xf32>, vector<8x192xf32> -> vector<8x192xf32>
    %363 = vector.extract_strided_slice %361 {offsets = [0, 0], sizes = [8, 128], strides = [1, 1]} : vector<8x192xf32> to vector<8x128xf32>
    %364 = vector.extract_strided_slice %362 {offsets = [0, 0], sizes = [8, 128], strides = [1, 1]} : vector<8x192xf32> to vector<8x128xf32>
    %365 = arith.addf %363, %364 : vector<8x128xf32>
    %366 = arith.negf %365 : vector<8x128xf32>
    %367 = math.exp %366 : vector<8x128xf32>
    %cst_175 = arith.constant 1.000000e+00 : f32
    %368 = vector.broadcast %cst_175 : f32 to vector<8x128xf32>
    %369 = arith.addf %368, %367 : vector<8x128xf32>
    %370 = arith.divf %368, %369 : vector<8x128xf32>
    %371 = vector.extract_strided_slice %370 {offsets = [0, 0], sizes = [8, 64], strides = [1, 1]} : vector<8x128xf32> to vector<8x64xf32>
    %372 = vector.extract_strided_slice %370 {offsets = [0, 64], sizes = [8, 64], strides = [1, 1]} : vector<8x128xf32> to vector<8x64xf32>
    %373 = vector.extract_strided_slice %361 {offsets = [0, 128], sizes = [8, 64], strides = [1, 1]} : vector<8x192xf32> to vector<8x64xf32>
    %374 = vector.extract_strided_slice %362 {offsets = [0, 128], sizes = [8, 64], strides = [1, 1]} : vector<8x192xf32> to vector<8x64xf32>
    %375 = arith.addf %374, %284 : vector<8x64xf32>
    %376 = arith.mulf %371, %375 : vector<8x64xf32>
    %377 = arith.addf %373, %376 : vector<8x64xf32>
    %378 = math.tanh %377 : vector<8x64xf32>
    %cst_176 = arith.constant 1.000000e+00 : f32
    %379 = vector.broadcast %cst_176 : f32 to vector<8x64xf32>
    %380 = arith.subf %379, %372 : vector<8x64xf32>
    %381 = arith.mulf %380, %378 : vector<8x64xf32>
    %382 = arith.mulf %372, %359 : vector<8x64xf32>
    %383 = arith.addf %381, %382 : vector<8x64xf32>
    %384 = arith.select %11, %383, %359 : vector<8x64xi1>, vector<8x64xf32>
    %c24_177 = arith.constant 24 : index
    %c0_178 = arith.constant 0 : index
    %385 = vector.load %arg10[%c24_177, %c0_178] : memref<64x64xf32, #tpu.memory_space<vmem>>, vector<8x64xf32>
    tpu.vector_store %arg10[%c24_177, %c0_178], %384 {strides = array<i32>} : memref<64x64xf32, #tpu.memory_space<vmem>>, vector<8x64xf32>,
    %c32_179 = arith.constant 32 : index
    %c0_180 = arith.constant 0 : index
    %386 = vector.load %arg14[%c32_179, %c0_180] : memref<64x192xf32, #tpu.memory_space<vmem>>, vector<8x192xf32>
    %cst_181 = arith.constant dense<0.000000e+00> : vector<8x192xf32>
    %387 = tpu.matmul %384, %280, %cst_181 {dimension_numbers = #tpu.dot_dimension_numbers<[1], [0], [0], [1], [0, 0, 1, 1], [], []>} : vector<8x64xf32>, vector<64x192xf32>, vector<8x192xf32> -> vector<8x192xf32>
    %388 = vector.extract_strided_slice %386 {offsets = [0, 0], sizes = [8, 128], strides = [1, 1]} : vector<8x192xf32> to vector<8x128xf32>
    %389 = vector.extract_strided_slice %387 {offsets = [0, 0], sizes = [8, 128], strides = [1, 1]} : vector<8x192xf32> to vector<8x128xf32>
    %390 = arith.addf %388, %389 : vector<8x128xf32>
    %391 = arith.negf %390 : vector<8x128xf32>
    %392 = math.exp %391 : vector<8x128xf32>
    %cst_182 = arith.constant 1.000000e+00 : f32
    %393 = vector.broadcast %cst_182 : f32 to vector<8x128xf32>
    %394 = arith.addf %393, %392 : vector<8x128xf32>
    %395 = arith.divf %393, %394 : vector<8x128xf32>
    %396 = vector.extract_strided_slice %395 {offsets = [0, 0], sizes = [8, 64], strides = [1, 1]} : vector<8x128xf32> to vector<8x64xf32>
    %397 = vector.extract_strided_slice %395 {offsets = [0, 64], sizes = [8, 64], strides = [1, 1]} : vector<8x128xf32> to vector<8x64xf32>
    %398 = vector.extract_strided_slice %386 {offsets = [0, 128], sizes = [8, 64], strides = [1, 1]} : vector<8x192xf32> to vector<8x64xf32>
    %399 = vector.extract_strided_slice %387 {offsets = [0, 128], sizes = [8, 64], strides = [1, 1]} : vector<8x192xf32> to vector<8x64xf32>
    %400 = arith.addf %399, %284 : vector<8x64xf32>
    %401 = arith.mulf %396, %400 : vector<8x64xf32>
    %402 = arith.addf %398, %401 : vector<8x64xf32>
    %403 = math.tanh %402 : vector<8x64xf32>
    %cst_183 = arith.constant 1.000000e+00 : f32
    %404 = vector.broadcast %cst_183 : f32 to vector<8x64xf32>
    %405 = arith.subf %404, %397 : vector<8x64xf32>
    %406 = arith.mulf %405, %403 : vector<8x64xf32>
    %407 = arith.mulf %397, %384 : vector<8x64xf32>
    %408 = arith.addf %406, %407 : vector<8x64xf32>
    %409 = arith.select %14, %408, %384 : vector<8x64xi1>, vector<8x64xf32>
    %c32_184 = arith.constant 32 : index
    %c0_185 = arith.constant 0 : index
    %410 = vector.load %arg10[%c32_184, %c0_185] : memref<64x64xf32, #tpu.memory_space<vmem>>, vector<8x64xf32>
    tpu.vector_store %arg10[%c32_184, %c0_185], %409 {strides = array<i32>} : memref<64x64xf32, #tpu.memory_space<vmem>>, vector<8x64xf32>,
    %c40_186 = arith.constant 40 : index
    %c0_187 = arith.constant 0 : index
    %411 = vector.load %arg14[%c40_186, %c0_187] : memref<64x192xf32, #tpu.memory_space<vmem>>, vector<8x192xf32>
    %cst_188 = arith.constant dense<0.000000e+00> : vector<8x192xf32>
    %412 = tpu.matmul %409, %280, %cst_188 {dimension_numbers = #tpu.dot_dimension_numbers<[1], [0], [0], [1], [0, 0, 1, 1], [], []>} : vector<8x64xf32>, vector<64x192xf32>, vector<8x192xf32> -> vector<8x192xf32>
    %413 = vector.extract_strided_slice %411 {offsets = [0, 0], sizes = [8, 128], strides = [1, 1]} : vector<8x192xf32> to vector<8x128xf32>
    %414 = vector.extract_strided_slice %412 {offsets = [0, 0], sizes = [8, 128], strides = [1, 1]} : vector<8x192xf32> to vector<8x128xf32>
    %415 = arith.addf %413, %414 : vector<8x128xf32>
    %416 = arith.negf %415 : vector<8x128xf32>
    %417 = math.exp %416 : vector<8x128xf32>
    %cst_189 = arith.constant 1.000000e+00 : f32
    %418 = vector.broadcast %cst_189 : f32 to vector<8x128xf32>
    %419 = arith.addf %418, %417 : vector<8x128xf32>
    %420 = arith.divf %418, %419 : vector<8x128xf32>
    %421 = vector.extract_strided_slice %420 {offsets = [0, 0], sizes = [8, 64], strides = [1, 1]} : vector<8x128xf32> to vector<8x64xf32>
    %422 = vector.extract_strided_slice %420 {offsets = [0, 64], sizes = [8, 64], strides = [1, 1]} : vector<8x128xf32> to vector<8x64xf32>
    %423 = vector.extract_strided_slice %411 {offsets = [0, 128], sizes = [8, 64], strides = [1, 1]} : vector<8x192xf32> to vector<8x64xf32>
    %424 = vector.extract_strided_slice %412 {offsets = [0, 128], sizes = [8, 64], strides = [1, 1]} : vector<8x192xf32> to vector<8x64xf32>
    %425 = arith.addf %424, %284 : vector<8x64xf32>
    %426 = arith.mulf %421, %425 : vector<8x64xf32>
    %427 = arith.addf %423, %426 : vector<8x64xf32>
    %428 = math.tanh %427 : vector<8x64xf32>
    %cst_190 = arith.constant 1.000000e+00 : f32
    %429 = vector.broadcast %cst_190 : f32 to vector<8x64xf32>
    %430 = arith.subf %429, %422 : vector<8x64xf32>
    %431 = arith.mulf %430, %428 : vector<8x64xf32>
    %432 = arith.mulf %422, %409 : vector<8x64xf32>
    %433 = arith.addf %431, %432 : vector<8x64xf32>
    %434 = arith.select %17, %433, %409 : vector<8x64xi1>, vector<8x64xf32>
    %c40_191 = arith.constant 40 : index
    %c0_192 = arith.constant 0 : index
    %435 = vector.load %arg10[%c40_191, %c0_192] : memref<64x64xf32, #tpu.memory_space<vmem>>, vector<8x64xf32>
    tpu.vector_store %arg10[%c40_191, %c0_192], %434 {strides = array<i32>} : memref<64x64xf32, #tpu.memory_space<vmem>>, vector<8x64xf32>,
    %c48_193 = arith.constant 48 : index
    %c0_194 = arith.constant 0 : index
    %436 = vector.load %arg14[%c48_193, %c0_194] : memref<64x192xf32, #tpu.memory_space<vmem>>, vector<8x192xf32>
    %cst_195 = arith.constant dense<0.000000e+00> : vector<8x192xf32>
    %437 = tpu.matmul %434, %280, %cst_195 {dimension_numbers = #tpu.dot_dimension_numbers<[1], [0], [0], [1], [0, 0, 1, 1], [], []>} : vector<8x64xf32>, vector<64x192xf32>, vector<8x192xf32> -> vector<8x192xf32>
    %438 = vector.extract_strided_slice %436 {offsets = [0, 0], sizes = [8, 128], strides = [1, 1]} : vector<8x192xf32> to vector<8x128xf32>
    %439 = vector.extract_strided_slice %437 {offsets = [0, 0], sizes = [8, 128], strides = [1, 1]} : vector<8x192xf32> to vector<8x128xf32>
    %440 = arith.addf %438, %439 : vector<8x128xf32>
    %441 = arith.negf %440 : vector<8x128xf32>
    %442 = math.exp %441 : vector<8x128xf32>
    %cst_196 = arith.constant 1.000000e+00 : f32
    %443 = vector.broadcast %cst_196 : f32 to vector<8x128xf32>
    %444 = arith.addf %443, %442 : vector<8x128xf32>
    %445 = arith.divf %443, %444 : vector<8x128xf32>
    %446 = vector.extract_strided_slice %445 {offsets = [0, 0], sizes = [8, 64], strides = [1, 1]} : vector<8x128xf32> to vector<8x64xf32>
    %447 = vector.extract_strided_slice %445 {offsets = [0, 64], sizes = [8, 64], strides = [1, 1]} : vector<8x128xf32> to vector<8x64xf32>
    %448 = vector.extract_strided_slice %436 {offsets = [0, 128], sizes = [8, 64], strides = [1, 1]} : vector<8x192xf32> to vector<8x64xf32>
    %449 = vector.extract_strided_slice %437 {offsets = [0, 128], sizes = [8, 64], strides = [1, 1]} : vector<8x192xf32> to vector<8x64xf32>
    %450 = arith.addf %449, %284 : vector<8x64xf32>
    %451 = arith.mulf %446, %450 : vector<8x64xf32>
    %452 = arith.addf %448, %451 : vector<8x64xf32>
    %453 = math.tanh %452 : vector<8x64xf32>
    %cst_197 = arith.constant 1.000000e+00 : f32
    %454 = vector.broadcast %cst_197 : f32 to vector<8x64xf32>
    %455 = arith.subf %454, %447 : vector<8x64xf32>
    %456 = arith.mulf %455, %453 : vector<8x64xf32>
    %457 = arith.mulf %447, %434 : vector<8x64xf32>
    %458 = arith.addf %456, %457 : vector<8x64xf32>
    %459 = arith.select %20, %458, %434 : vector<8x64xi1>, vector<8x64xf32>
    %c48_198 = arith.constant 48 : index
    %c0_199 = arith.constant 0 : index
    %460 = vector.load %arg10[%c48_198, %c0_199] : memref<64x64xf32, #tpu.memory_space<vmem>>, vector<8x64xf32>
    tpu.vector_store %arg10[%c48_198, %c0_199], %459 {strides = array<i32>} : memref<64x64xf32, #tpu.memory_space<vmem>>, vector<8x64xf32>,
    %c56_200 = arith.constant 56 : index
    %c0_201 = arith.constant 0 : index
    %461 = vector.load %arg14[%c56_200, %c0_201] : memref<64x192xf32, #tpu.memory_space<vmem>>, vector<8x192xf32>
    %cst_202 = arith.constant dense<0.000000e+00> : vector<8x192xf32>
    %462 = tpu.matmul %459, %280, %cst_202 {dimension_numbers = #tpu.dot_dimension_numbers<[1], [0], [0], [1], [0, 0, 1, 1], [], []>} : vector<8x64xf32>, vector<64x192xf32>, vector<8x192xf32> -> vector<8x192xf32>
    %463 = vector.extract_strided_slice %461 {offsets = [0, 0], sizes = [8, 128], strides = [1, 1]} : vector<8x192xf32> to vector<8x128xf32>
    %464 = vector.extract_strided_slice %462 {offsets = [0, 0], sizes = [8, 128], strides = [1, 1]} : vector<8x192xf32> to vector<8x128xf32>
    %465 = arith.addf %463, %464 : vector<8x128xf32>
    %466 = arith.negf %465 : vector<8x128xf32>
    %467 = math.exp %466 : vector<8x128xf32>
    %cst_203 = arith.constant 1.000000e+00 : f32
    %468 = vector.broadcast %cst_203 : f32 to vector<8x128xf32>
    %469 = arith.addf %468, %467 : vector<8x128xf32>
    %470 = arith.divf %468, %469 : vector<8x128xf32>
    %471 = vector.extract_strided_slice %470 {offsets = [0, 0], sizes = [8, 64], strides = [1, 1]} : vector<8x128xf32> to vector<8x64xf32>
    %472 = vector.extract_strided_slice %470 {offsets = [0, 64], sizes = [8, 64], strides = [1, 1]} : vector<8x128xf32> to vector<8x64xf32>
    %473 = vector.extract_strided_slice %461 {offsets = [0, 128], sizes = [8, 64], strides = [1, 1]} : vector<8x192xf32> to vector<8x64xf32>
    %474 = vector.extract_strided_slice %462 {offsets = [0, 128], sizes = [8, 64], strides = [1, 1]} : vector<8x192xf32> to vector<8x64xf32>
    %475 = arith.addf %474, %284 : vector<8x64xf32>
    %476 = arith.mulf %471, %475 : vector<8x64xf32>
    %477 = arith.addf %473, %476 : vector<8x64xf32>
    %478 = math.tanh %477 : vector<8x64xf32>
    %cst_204 = arith.constant 1.000000e+00 : f32
    %479 = vector.broadcast %cst_204 : f32 to vector<8x64xf32>
    %480 = arith.subf %479, %472 : vector<8x64xf32>
    %481 = arith.mulf %480, %478 : vector<8x64xf32>
    %482 = arith.mulf %472, %459 : vector<8x64xf32>
    %483 = arith.addf %481, %482 : vector<8x64xf32>
    %484 = arith.select %23, %483, %459 : vector<8x64xi1>, vector<8x64xf32>
    %c56_205 = arith.constant 56 : index
    %c0_206 = arith.constant 0 : index
    %485 = vector.load %arg10[%c56_205, %c0_206] : memref<64x64xf32, #tpu.memory_space<vmem>>, vector<8x64xf32>
    tpu.vector_store %arg10[%c56_205, %c0_206], %484 {strides = array<i32>} : memref<64x64xf32, #tpu.memory_space<vmem>>, vector<8x64xf32>,
    %486 = vector.extract_strided_slice %484 {offsets = [0, 0], sizes = [8, 32], strides = [1, 1]} : vector<8x64xf32> to vector<8x32xf32>
    %487 = vector.extract_strided_slice %484 {offsets = [0, 32], sizes = [8, 32], strides = [1, 1]} : vector<8x64xf32> to vector<8x32xf32>
    %488 = arith.addf %486, %487 : vector<8x32xf32>
    %c1_207 = arith.constant 1 : index
    %c0_208 = arith.constant 0 : index
    %c0_209 = arith.constant 0 : index
    %489 = vector.load %arg11[%c1_207, %c0_208, %c0_209] : memref<2x8x32xf32, #tpu.memory_space<vmem>>, vector<1x8x32xf32>
    %490 = vector.shape_cast %489 : vector<1x8x32xf32> to vector<8x32xf32>
    %491 = vector.shape_cast %488 : vector<8x32xf32> to vector<1x8x32xf32>
    tpu.vector_store %arg11[%c1_207, %c0_208, %c0_209], %491 {strides = array<i32>} : memref<2x8x32xf32, #tpu.memory_space<vmem>>, vector<1x8x32xf32>,
    %c0_210 = arith.constant 0 : index
    %c0_211 = arith.constant 0 : index
    %492 = vector.load %arg10[%c0_210, %c0_211] : memref<64x64xf32, #tpu.memory_space<vmem>>, vector<64x64xf32>
    %c0_212 = arith.constant 0 : index
    %c0_213 = arith.constant 0 : index
    %493 = vector.load %arg2[%c0_212, %c0_213] : memref<64x64xf32, #tpu.memory_space<vmem>>, vector<64x64xf32>
    %494 = arith.mulf %492, %493 : vector<64x64xf32>
    %c0_214 = arith.constant 0 : index
    %c0_215 = arith.constant 0 : index
    %495 = vector.load %arg10[%c0_214, %c0_215] : memref<64x64xf32, #tpu.memory_space<vmem>>, vector<64x64xf32>
    tpu.vector_store %arg10[%c0_214, %c0_215], %494 {strides = array<i32>} : memref<64x64xf32, #tpu.memory_space<vmem>>, vector<64x64xf32>,
    return
  }
}

</mosaic_0001>

<bundles_post_ra>
// kernel: encoder_forward.1
= control target key start
LH: loop header
LB: loop body
LE: loop exit
PB: predicated region body
PF: predicated region fallthrough
CT: control target
= control target key end

     0   :  { %v2726_v3 = vmov 0.0   ;;  %vm85_vm0 = vcmask 261120   ;;  %v362_v49 = vlaneseq  ;;  %vm389_vm1 = vcmask 523264   ;;  %s2727_s14 = smov 64   ;;  %s3914_s4 = inlined_call_operand.vmem [shape: f32[32,192], index: 4, kind: input, shape index: {}]   ;;  %s3915_s3 = inlined_call_operand.vmem [shape: f32[32,192], index: 3, kind: input, shape index: {}]   ;;  %s3916_s1 = inlined_call_operand.vmem [shape: f32[64,32], index: 1, kind: input, shape index: {}]   ;;  %s3917_s0 = inlined_call_operand.vmem [shape: f32[64,32], index: 0, kind: input, shape index: {}]   ;;  %s3918_s7 = inlined_call_operand.vmem [shape: f32[2,64,192], index: 7, kind: input, shape index: {}]   ;;  %s3919_s8 = inlined_call_operand.vmem [shape: f32[2,1,192], index: 8, kind: input, shape index: {}]   ;;  %s3920_s9 = inlined_call_operand.vmem [shape: f32[2,1,64], index: 9, kind: input, shape index: {}]   ;;  %s3921_s2 = inlined_call_operand.vmem [shape: f32[64,64], index: 2, kind: input, shape index: {}]   ;;  %s3922_s5 = inlined_call_operand.vmem [shape: f32[1,64,192], index: 5, kind: input, shape index: {}]   ;;  %s3923_s6 = inlined_call_operand.vmem [shape: f32[1,64,192], index: 6, kind: input, shape index: {}]   ;;  %s3924_s10 = inlined_call_operand.vmem [shape: f32[64,64], index: 10, kind: output, shape index: {0}]   ;;  %s3925_s11 = inlined_call_operand.vmem [shape: f32[2,8,32], index: 11, kind: output, shape index: {1}]  }
   0x1   :  { %v84_v0 = vld [vmem:[%s3914_s4 + $0x38] sm:$0xff]  ;;  %v83_v2 = vld [vmem:[%s3914_s4 + $0x30] sm:$0xff]  ;;  %174 = vmatprep.mubr.f32.mxu0 %v2726_v3  ;;  %311 = vmatprep.mubr.f32.mxu1 %v2726_v3  ;;  %v82_v5 = vld [vmem:[%s3914_s4 + $0x28] sm:$0xff] }
   0x2   :  { %v68_v1 = vld [vmem:[%s3915_s3 + $0x38] sm:$0xff]  ;;  %134 = vmatprep.subr.mxu0 %v84_v0  ;;  %v67_v4 = vld [vmem:[%s3915_s3 + $0x30] sm:$0xff]  ;;  %v66_v6 = vld [vmem:[%s3915_s3 + $0x28] sm:$0xff]  ;;  %v3051_v50 = vshrl.u32 %v362_v49, 7 }
   0x3   :  { %271 = vmatprep.subr.mxu1 %v68_v1  ;;  %135 = vmatpush1.msra.mxu0 %v83_v2  ;;  %v81_v7 = vld [vmem:[%s3914_s4 + $0x20] sm:$0xff]  ;;  %v80_v9 = vld [vmem:[%s3914_s4 + $0x18] sm:$0xff]  ;;  %v79_v11 = vld [vmem:[%s3914_s4 + $0x10] sm:$0xff] }
   0x4   :  { %272 = vmatpush1.msra.mxu1 %v67_v4  ;;  %v65_v8 = vld [vmem:[%s3915_s3 + $0x20] sm:$0xff]  ;;  %136 = vmatprep.subr.mxu0 %v82_v5  ;;  %v64_v10 = vld [vmem:[%s3915_s3 + $0x18] sm:$0xff]  ;;  %v63_v12 = vld [vmem:[%s3915_s3 + $0x10] sm:$0xff]  ;;  %v368_v51 = vsub.s32 1, %v3051_v50  ;;  %v364_v55 = vsub.s32 0, %v3051_v50 }
   0x5   :  { %273 = vmatprep.subr.mxu1 %v66_v6  ;;  %137 = vmatpush1.msra.mxu0 %v81_v7  ;;  %v78_v13 = vld [vmem:[%s3914_s4 + $0x8] sm:$0xff]  ;;  %v77_v15 = vld [vmem:[%s3914_s4] sm:$0xff]  ;;  %v2848_v19 = vld [vmem:[%s3918_s7 + $0x78] sm:$0xff] }
   0x6   :  { %274 = vmatpush1.msra.mxu1 %v65_v8  ;;  %v62_v14 = vld [vmem:[%s3915_s3 + $0x8] sm:$0xff]  ;;  %138 = vmatprep.subr.mxu0 %v80_v9  ;;  %v61_v16 = vld [vmem:[%s3915_s3] sm:$0xff]  ;;  %v2853_v20 = vld [vmem:[%s3918_s7 + $0x70] sm:$0xff] }
   0x7   :  { %275 = vmatprep.subr.mxu1 %v64_v10  ;;  %139 = vmatpush1.msra.mxu0 %v79_v11  ;;  %v69_v17 = vld [vmem:[%s3916_s1] sm:$0xff]  ;;  %v2860_v21 = vld [vmem:[%s3918_s7 + $0x68] sm:$0xff]  ;;  %v2881_v25 = vld [vmem:[%s3918_s7 + $0x58] sm:$0xff] }
   0x8   :  { %276 = vmatpush1.msra.mxu1 %v63_v12  ;;  %v53_v18 = vld [vmem:[%s3917_s0] sm:$0xff]  ;;  %140 = vmatprep.subr.mxu0 %v78_v13  ;;  %v70_v22 = vld [vmem:[%s3916_s1 + $0x8] sm:$0xff]  ;;  %v2889_v26 = vld [vmem:[%s3918_s7 + $0x50] sm:$0xff] }
   0x9   :  { %277 = vmatprep.subr.mxu1 %v62_v14  ;;  %141 = vmatpush1.msra.mxu0 %v77_v15  ;;  %v54_v23 = vld [vmem:[%s3917_s0 + $0x8] sm:$0xff]  ;;  %v2875_v24 = vld [vmem:[%s3918_s7 + $0x60] sm:$0xff]  ;;  %v71_v27 = vld [vmem:[%s3916_s1 + $0x10] sm:$0xff] }
   0xa   :  { %278 = vmatpush1.msra.mxu1 %v61_v16  ;;  %2544 = vmatmul.mubr.msk.f32.vlgmr.msra.gmra.mxu0 %vm85_vm0, %v69_v17  ;;  %v55_v28 = vld [vmem:[%s3917_s0 + $0x10] sm:$0xff]  ;;  %v2905_v29 = vld [vmem:[%s3918_s7 + $0x48] sm:$0xff]  ;;  %v2913_v30 = vld [vmem:[%s3918_s7 + $0x40] sm:$0xff] }
   0xb   :  { %2552 = vmatmul.mubr.msk.f32.vlgmr.msra.gmra.mxu1 %vm85_vm0, %v53_v18  ;;  %449 = vmatprep.subr.mxu0 %v2848_v19  ;;  %v72_v31 = vld [vmem:[%s3916_s1 + $0x18] sm:$0xff]  ;;  %v2937_v34 = vld [vmem:[%s3918_s7 + $0x30] sm:$0xff]  ;;  %v73_v35 = vld [vmem:[%s3916_s1 + $0x20] sm:$0xff] }
   0xc   :  { %180 = vmatprep.mubr.f32.mxu0 %v2726_v3  ;;  %450 = vmatpush1.msra.mxu0 %v2853_v20  ;;  %v56_v32 = vld [vmem:[%s3917_s0 + $0x18] sm:$0xff]  ;;  %v57_v36 = vld [vmem:[%s3917_s0 + $0x20] sm:$0xff]  ;;  %v2953_v37 = vld [vmem:[%s3918_s7 + $0x28] sm:$0xff] }
   0xd   :  { %317 = vmatprep.mubr.f32.mxu1 %v2726_v3  ;;  %451 = vmatprep.subr.mxu0 %v2860_v21  ;;  %v2929_v33 = vld [vmem:[%s3918_s7 + $0x38] sm:$0xff]  ;;  %v2961_v38 = vld [vmem:[%s3918_s7 + $0x20] sm:$0xff]  ;;  %v74_v39 = vld [vmem:[%s3916_s1 + $0x28] sm:$0xff] }
   0xe   :  { %550 = vmatprep.subr.mxu1 %v2848_v19  ;;  %2545 = vmatmul.mubr.msk.f32.gmra.mxu0 %vm85_vm0, %v70_v22  ;;  %v58_v40 = vld [vmem:[%s3917_s0 + $0x28] sm:$0xff]  ;;  %v2977_v41 = vld [vmem:[%s3918_s7 + $0x18] sm:$0xff]  ;;  %v2985_v42 = vld [vmem:[%s3918_s7 + $0x10] sm:$0xff] }
   0xf   :  { %2553 = vmatmul.mubr.msk.f32.gmra.mxu1 %vm85_vm0, %v54_v23  ;;  %452 = vmatpush1.msra.mxu0 %v2875_v24  ;;  %v75_v43 = vld [vmem:[%s3916_s1 + $0x30] sm:$0xff]  ;;  %v3001_v45 = vld [vmem:[%s3918_s7 + $0x8] sm:$0xff]  ;;  %v3009_v46 = vld [vmem:[%s3918_s7] sm:$0xff] }
  0x10   :  { %186 = vmatprep.mubr.f32.mxu0 %v2726_v3  ;;  %323 = vmatprep.mubr.f32.mxu1 %v2726_v3  ;;  %v59_v44 = vld [vmem:[%s3917_s0 + $0x30] sm:$0xff]  ;;  %v76_v47 = vld [vmem:[%s3916_s1 + $0x38] sm:$0xff]  ;;  %v360_v54 = vld [vmem:[%s3919_s8] sm:$0x3] }
  0x11   :  { %453 = vmatprep.subr.mxu0 %v2881_v25  ;;  %551 = vmatpush1.msra.mxu1 %v2853_v20  ;;  %v60_v48 = vld [vmem:[%s3917_s0 + $0x38] sm:$0xff]  ;;  %v3060_v56 = vrot.slane %v360_v54, %v368_v51  ;;  %v365_v62 = vrot.slane %v360_v54, %v364_v55 }
  0x12   :  { %454 = vmatpush1.msra.mxu0 %v2889_v26  ;;  %552 = vmatprep.subr.mxu1 %v2860_v21 }
  0x13   :  { %2546 = vmatmul.mubr.msk.f32.gmra.mxu0 %vm85_vm0, %v71_v27  ;;  %2554 = vmatmul.mubr.msk.f32.gmra.mxu1 %vm85_vm0, %v55_v28 }
  0x14   :  { %192 = vmatprep.mubr.f32.mxu0 %v2726_v3  ;;  %329 = vmatprep.mubr.f32.mxu1 %v2726_v3 }
  0x15   :  { %455 = vmatprep.subr.mxu0 %v2905_v29  ;;  %553 = vmatpush1.msra.mxu1 %v2875_v24 }
  0x16   :  { %456 = vmatpush1.msra.mxu0 %v2913_v30  ;;  %554 = vmatprep.subr.mxu1 %v2881_v25 }
  0x17   :  { %2547 = vmatmul.mubr.msk.f32.gmra.mxu0 %vm85_vm0, %v72_v31  ;;  %2555 = vmatmul.mubr.msk.f32.gmra.mxu1 %vm85_vm0, %v56_v32 }
  0x18   :  { %198 = vmatprep.mubr.f32.mxu0 %v2726_v3  ;;  %335 = vmatprep.mubr.f32.mxu1 %v2726_v3 }
  0x19   :  { %457 = vmatprep.subr.mxu0 %v2929_v33  ;;  %555 = vmatpush1.msra.mxu1 %v2889_v26 }
  0x1a   :  { %458 = vmatpush1.msra.mxu0 %v2937_v34  ;;  %556 = vmatprep.subr.mxu1 %v2905_v29 }
  0x1b   :  { %2548 = vmatmul.mubr.msk.f32.gmra.mxu0 %vm85_vm0, %v73_v35  ;;  %2556 = vmatmul.mubr.msk.f32.gmra.mxu1 %vm85_vm0, %v57_v36 }
  0x1c   :  { %204 = vmatprep.mubr.f32.mxu0 %v2726_v3  ;;  %341 = vmatprep.mubr.f32.mxu1 %v2726_v3 }
  0x1d   :  { %459 = vmatprep.subr.mxu0 %v2953_v37  ;;  %557 = vmatpush1.msra.mxu1 %v2913_v30 }
  0x1e   :  { %460 = vmatpush1.msra.mxu0 %v2961_v38  ;;  %558 = vmatprep.subr.mxu1 %v2929_v33 }
  0x1f   :  { %2549 = vmatmul.mubr.msk.f32.gmra.mxu0 %vm85_vm0, %v74_v39  ;;  %2557 = vmatmul.mubr.msk.f32.gmra.mxu1 %vm85_vm0, %v58_v40 }
  0x20   :  { %210 = vmatprep.mubr.f32.mxu0 %v2726_v3  ;;  %347 = vmatprep.mubr.f32.mxu1 %v2726_v3 }
  0x21   :  { %461 = vmatprep.subr.mxu0 %v2977_v41  ;;  %559 = vmatpush1.msra.mxu1 %v2937_v34 }
  0x22   :  { %462 = vmatpush1.msra.mxu0 %v2985_v42  ;;  %560 = vmatprep.subr.mxu1 %v2953_v37 }
  0x23   :  { %2550 = vmatmul.mubr.msk.f32.gmra.mxu0 %vm85_vm0, %v75_v43  ;;  %2558 = vmatmul.mubr.msk.f32.gmra.mxu1 %vm85_vm0, %v59_v44 }
  0x24   :  { %216 = vmatprep.mubr.f32.mxu0 %v2726_v3  ;;  %353 = vmatprep.mubr.f32.mxu1 %v2726_v3 }
  0x25   :  { %463 = vmatprep.subr.mxu0 %v3001_v45  ;;  %561 = vmatpush1.msra.mxu1 %v2961_v38 }
  0x26   :  { %464 = vmatpush1.msra.mxu0 %v3009_v46  ;;  %562 = vmatprep.subr.mxu1 %v2977_v41 }
  0x27   :  { %2551 = vmatmul.mubr.msk.f32.gmra.mxu0 %vm85_vm0, %v76_v47  ;;  %2559 = vmatmul.mubr.msk.f32.gmra.mxu1 %vm85_vm0, %v60_v48 }
  0x28   :  { %497 = vmatprep.mubr.f32.mxu0 %v2726_v3  ;;  %563 = vmatpush1.msra.mxu1 %v2985_v42 }
  0x29   :  { %598 = vmatprep.mubr.f32.mxu1 %v2726_v3  ;;  %564 = vmatprep.subr.mxu1 %v3001_v45 }
  0x2a   :  { %654 = vmatprep.subr.mxu0 %v2848_v19  ;;  %565 = vmatpush1.msra.mxu1 %v3009_v46 }
  0x2b   :  { %498 = vmatmul.mubr.f32.vlgmr.msra.gmra.mxu0 %v2726_v3  ;;  %758 = vmatprep.subr.mxu1 %v2848_v19 }
  0x2c   :  { %655 = vmatpush1.msra.mxu0 %v2853_v20  ;;  %702 = vmatprep.mubr.f32.mxu0 %v2726_v3 }
  0x2d   :  { %656 = vmatprep.subr.mxu0 %v2860_v21 }
  0x2e   :  { %657 = vmatpush1.msra.mxu0 %v2875_v24 }
  0x2f   :  { %658 = vmatprep.subr.mxu0 %v2881_v25 }
  0x30   :  { %659 = vmatpush1.msra.mxu0 %v2889_v26 }
  0x31   :  { %660 = vmatprep.subr.mxu0 %v2905_v29 }
  0x32   :  { %661 = vmatpush1.msra.mxu0 %v2913_v30 }
  0x33   :  { %662 = vmatprep.subr.mxu0 %v2929_v33 }
  0x34   :  { %663 = vmatpush1.msra.mxu0 %v2937_v34 }
  0x35   :  { %664 = vmatprep.subr.mxu0 %v2953_v37 }
  0x36   :  { %665 = vmatpush1.msra.mxu0 %v2961_v38 }
  0x37   :  { %666 = vmatprep.subr.mxu0 %v2977_v41 }
  0x38   :  { %667 = vmatpush1.msra.mxu0 %v2985_v42 }
  0x39   :  { %668 = vmatprep.subr.mxu0 %v3001_v45 }
  0x3a   :  { %669 = vmatpush1.msra.mxu0 %v3009_v46 }
  0x3b   :  { %862 = vmatprep.subr.mxu0 %v2848_v19 }
  0xca   :  { %v176_v52 = vpop.f32.mrf.mxu0 }
  0xcb   :  { %v313_v53 = vpop.f32.mrf.mxu1 }
  0xcc   :  { %v178_v57 = vpop.f32.mrf.mxu0 }
  0xcd   :  { %v315_v58 = vpop.f32.mrf.mxu1 }
  0xce   :  { %v316_v59 = vadd.f32 %v315_v58, %v178_v57  ;;  %v182_v60 = vpop.f32.mrf.mxu0 }
  0xcf   :  { %v319_v61 = vpop.f32.mrf.mxu1 }
  0xd0   :  { %v373_v63 = vadd.f32 %v3060_v56, %v316_v59  ;;  %v320_v0 = vadd.f32 %v319_v61, %v182_v60  ;;  %v184_v1 = vpop.f32.mrf.mxu0 }
  0xd1   :  { %v321_v2 = vpop.f32.mrf.mxu1 }
  0xd2   :  { %390 = vst.msk [vmem:[#allocation4 + $0x8] sm:$0xff] %vm389_vm1, %v373_v63  ;;  %v3066_v4 = vadd.f32 %v365_v62, %v320_v0  ;;  %v322_v5 = vadd.f32 %v321_v2, %v184_v1 }
  0xd3   :  { %v188_v6 = vpop.f32.mrf.mxu0  ;;  %v325_v7 = vpop.f32.mrf.mxu1 }
  0xd4   :  { %v375_v8 = vadd.f32 %v3060_v56, %v322_v5  ;;  %v326_v9 = vadd.f32 %v325_v7, %v188_v6  ;;  %v314_v5 = vadd.f32 %v313_v53, %v176_v52 }
  0xd5   :  { %v190_v10 = vpop.f32.mrf.mxu0  ;;  %v327_v11 = vpop.f32.mrf.mxu1 }
  0xd6   :  { %392 = vst.msk [vmem:[#allocation4 + $0x18] sm:$0xff] %vm389_vm1, %v375_v8  ;;  %v3070_v12 = vadd.f32 %v365_v62, %v326_v9  ;;  %v328_v13 = vadd.f32 %v327_v11, %v190_v10 }
  0xd7   :  { %v194_v14 = vpop.f32.mrf.mxu0  ;;  %v331_v15 = vpop.f32.mrf.mxu1 }
  0xd8   :  { %v377_v16 = vadd.f32 %v3060_v56, %v328_v13  ;;  %v332_v17 = vadd.f32 %v331_v15, %v194_v14  ;;  %v372_v15 = vadd.f32 %v365_v62, %v314_v5 }
  0xd9   :  { %v196_v18 = vpop.f32.mrf.mxu0  ;;  %v333_v22 = vpop.f32.mrf.mxu1 }
  0xda   :  { %394 = vst.msk [vmem:[#allocation4 + $0x28] sm:$0xff] %vm389_vm1, %v377_v16  ;;  %v3074_v23 = vadd.f32 %v365_v62, %v332_v17  ;;  %v334_v27 = vadd.f32 %v333_v22, %v196_v18 }
  0xdb   :  { %v200_v28 = vpop.f32.mrf.mxu0  ;;  %v337_v31 = vpop.f32.mrf.mxu1 }
  0xdc   :  { %v379_v32 = vadd.f32 %v3060_v56, %v334_v27  ;;  %v338_v35 = vadd.f32 %v337_v31, %v200_v28  ;;  %v3097_v31 = vld [vmem:[%s3920_s9] ss:$0 sm:$0xff] }
  0xdd   :  { %v202_v36 = vpop.f32.mrf.mxu0  ;;  %v339_v39 = vpop.f32.mrf.mxu1 }
  0xde   :  { %396 = vst.msk [vmem:[#allocation4 + $0x38] sm:$0xff] %vm389_vm1, %v379_v32  ;;  %v3078_v40 = vadd.f32 %v365_v62, %v338_v35  ;;  %v340_v43 = vadd.f32 %v339_v39, %v202_v36  ;;  %v429_v39 = vld [vmem:[#allocation4 + $0x8] sm:$0xff] }
  0xdf   :  { %v206_v44 = vpop.f32.mrf.mxu0  ;;  %v343_v47 = vpop.f32.mrf.mxu1 }
  0xe0   :  { %v381_v48 = vadd.f32 %v3060_v56, %v340_v43  ;;  %v344_v49 = vadd.f32 %v343_v47, %v206_v44 }
  0xe1   :  { %v208_v54 = vpop.f32.mrf.mxu0  ;;  %v345_v57 = vpop.f32.mrf.mxu1 }
  0xe2   :  { %398 = vst.msk [vmem:[#allocation4 + $0x48] sm:$0xff] %vm389_vm1, %v381_v48  ;;  %v3082_v58 = vadd.f32 %v365_v62, %v344_v49  ;;  %v346_v59 = vadd.f32 %v345_v57, %v208_v54  ;;  %v3105_v57 = vld [vmem:[%s3921_s2] sm:$0xff] }
  0xe3   :  { %v212_v60 = vpop.f32.mrf.mxu0  ;;  %v349_v61 = vpop.f32.mrf.mxu1  ;;  %vm38_vm2 = vcmp.ne.f32.partialorder %v3105_v57, 0.0  ;;  %v2512_v57 = vld [vmem:[%s3921_s2] sm:$0xff] }
  0xe4   :  { %v383_v63 = vadd.f32 %v3060_v56, %v346_v59  ;;  %v350_v0 = vadd.f32 %v349_v61, %v212_v60 }
  0xe5   :  { %v214_v1 = vpop.f32.mrf.mxu0  ;;  %v351_v2 = vpop.f32.mrf.mxu1 }
  0xe6   :  { %400 = vst.msk [vmem:[#allocation4 + $0x58] sm:$0xff] %vm389_vm1, %v383_v63  ;;  %v3086_v6 = vadd.f32 %v365_v62, %v350_v0  ;;  %v352_v7 = vadd.f32 %v351_v2, %v214_v1 }
  0xe7   :  { %v218_v8 = vpop.f32.mrf.mxu0  ;;  %v355_v9 = vpop.f32.mrf.mxu1 }
  0xe8   :  { %v385_v10 = vadd.f32 %v3060_v56, %v352_v7  ;;  %v356_v11 = vadd.f32 %v355_v9, %v218_v8 }
  0xe9   :  { %v220_v13 = vpop.f32.mrf.mxu0  ;;  %v357_v14 = vpop.f32.mrf.mxu1 }
  0xea   :  { %402 = vst.msk [vmem:[#allocation4 + $0x68] sm:$0xff] %vm389_vm1, %v385_v10  ;;  %v3090_v16 = vadd.f32 %v365_v62, %v356_v11  ;;  %v358_v17 = vadd.f32 %v357_v14, %v220_v13  ;;  %v530_v11 = vld [vmem:[#allocation4 + $0x18] sm:$0xff] }
  0xeb   :  { %v499_v18 = vpop.f32.mrf.mxu0 }
  0xec   :  { %v387_v52 = vadd.f32 %v3060_v56, %v358_v17  ;;  %v504_v53 = vadd.f32 %v499_v18, %v372_v15 }
  0xed   :  { %v501_v32 = vpop.f32.mrf.mxu0 }
  0xee   :  { %404 = vst.msk [vmem:[#allocation4 + $0x78] sm:$0xff] %vm389_vm1, %v387_v52  ;;  %v2561_v22 = vmul.f32 -1.442695, %v504_v53  ;;  %v511_v62 = vadd.f32 %v3097_v31, %v501_v32 }
  0xf0   :  { %2630 = vpow2.f32 %v2561_v22  ;;  %v3141_v22 = vld [vmem:[%s3921_s2 + $0x8] sm:$0xff] }
  0xf1   :  { %vm40_vm3 = vcmp.ne.f32.partialorder %v3141_v22, 0.0  ;;  %v2513_v22 = vld [vmem:[%s3921_s2 + $0x8] sm:$0xff] }
  0xfd   :  { %v2631_v27 = vpop.eup %2630 }
  0xfe   :  { %v508_v28 = vadd.f32 1.0, %v2631_v27 }
 0x100   :  { %2632 = vrcp.f32 %v508_v28 }
 0x10d   :  { %v2633_v35 = vpop.eup %2632 }
 0x10e   :  { %v512_v36 = vmul.f32 %v2633_v35, %v511_v62  ;;  %v515_v44 = vsub.f32 1.0, %v2633_v35  ;;  %v521_v48 = vmul.f32 0.0, %v2633_v35 }
 0x110   :  { %v513_v56 = vadd.f32 %v512_v36, %v429_v39 }
 0x112   :  { %2634 = vtanh.f32 %v513_v56 }
 0x11f   :  { %v2635_v43 = vpop.eup %2634 }
 0x120   :  { %517 = vrot.lane.b32.xlu0 %v2635_v43, %s2727_s14 }
 0x192   :  { %v518_v47 = vpop.permute.xlu0 %517 }
 0x193   :  { %v520_v49 = vmul.f32 %v518_v47, %v515_v44 }
 0x195   :  { %v522_v54 = vadd.f32 %v521_v48, %v520_v49  ;;  %v634_v49 = vld [vmem:[#allocation4 + $0x28] sm:$0xff] }
 0x197   :  { %524 = vrot.lane.b32.xlu0 %v522_v54, %s2727_s14 }
 0x209   :  { %v525_v59 = vpop.permute.xlu0 %524 }
 0x20a   :  { %v527_v60 = vsel %vm38_vm2, %v525_v59, 0.0 }
 0x20b   :  { %528 = vst.msk [vmem:[#allocation2] sm:$0xff] %vm389_vm1, %v527_v60  ;;  %2562 = vmatmul.mubr.msk.f32.vlgmr.msra.gmra.mxu1 %vm389_vm1, %v527_v60 }
 0x20c   :  { %759 = vmatpush1.msra.mxu1 %v2853_v20  ;;  %806 = vmatprep.mubr.f32.mxu1 %v2726_v3 }
 0x20d   :  { %760 = vmatprep.subr.mxu1 %v2860_v21 }
 0x20e   :  { %761 = vmatpush1.msra.mxu1 %v2875_v24 }
 0x20f   :  { %762 = vmatprep.subr.mxu1 %v2881_v25 }
 0x210   :  { %763 = vmatpush1.msra.mxu1 %v2889_v26 }
 0x211   :  { %764 = vmatprep.subr.mxu1 %v2905_v29 }
 0x212   :  { %765 = vmatpush1.msra.mxu1 %v2913_v30  ;;  %v3120_v61 = vld [vmem:[#allocation2] sm:$0xff] }
 0x213   :  { %766 = vmatprep.subr.mxu1 %v2929_v33  ;;  %1278 = vst.msk [vmem:[#allocation3 + $0x38] sm:$0xff] %vm389_vm1, %v3120_v61 }
 0x214   :  { %767 = vmatpush1.msra.mxu1 %v2937_v34 }
 0x215   :  { %768 = vmatprep.subr.mxu1 %v2953_v37 }
 0x216   :  { %769 = vmatpush1.msra.mxu1 %v2961_v38 }
 0x217   :  { %770 = vmatprep.subr.mxu1 %v2977_v41 }
 0x218   :  { %771 = vmatpush1.msra.mxu1 %v2985_v42 }
 0x219   :  { %772 = vmatprep.subr.mxu1 %v3001_v45 }
 0x21a   :  { %773 = vmatpush1.msra.mxu1 %v3009_v46 }
 0x21b   :  { %966 = vmatprep.subr.mxu1 %v2848_v19 }
 0x2cb   :  { %v600_v63 = vpop.f32.mrf.mxu1 }
 0x2cc   :  { %v605_v0 = vadd.f32 %v600_v63, %v3066_v4 }
 0x2cd   :  { %v602_v7 = vpop.f32.mrf.mxu1 }
 0x2ce   :  { %v2563_v1 = vmul.f32 -1.442695, %v605_v0  ;;  %v612_v8 = vadd.f32 %v3097_v31, %v602_v7 }
 0x2d0   :  { %2636 = vpow2.f32 %v2563_v1 }
 0x2dd   :  { %v2637_v2 = vpop.eup %2636 }
 0x2de   :  { %v609_v5 = vadd.f32 1.0, %v2637_v2 }
 0x2e0   :  { %2638 = vrcp.f32 %v609_v5  ;;  %v3177_v5 = vld [vmem:[%s3921_s2 + $0x10] sm:$0xff] }
 0x2e1   :  { %vm42_vm4 = vcmp.ne.f32.partialorder %v3177_v5, 0.0  ;;  %v2514_v5 = vld [vmem:[%s3921_s2 + $0x10] sm:$0xff] }
 0x2ed   :  { %v2639_v9 = vpop.eup %2638 }
 0x2ee   :  { %v613_v10 = vmul.f32 %v2639_v9, %v612_v8  ;;  %v616_v4 = vsub.f32 1.0, %v2639_v9 }
 0x2f0   :  { %v614_v13 = vadd.f32 %v613_v10, %v530_v11 }
 0x2f2   :  { %2640 = vtanh.f32 %v614_v13 }
 0x2ff   :  { %v2641_v14 = vpop.eup %2640 }
 0x300   :  { %618 = vrot.lane.b32.xlu1 %v2641_v14, %s2727_s14 }
 0x304   :  { %622 = vrot.lane.b32.xlu1 %v527_v60, %s2727_s14 }
 0x372   :  { %v619_v15 = vpop.permute.xlu1 %618 }
 0x373   :  { %v621_v18 = vmul.f32 %v619_v15, %v616_v4 }
 0x376   :  { %v623_v17 = vpop.permute.xlu1 %622 }
 0x377   :  { %v625_v52 = vmul.f32 %v2639_v9, %v623_v17 }
 0x379   :  { %v626_v53 = vadd.f32 %v625_v52, %v621_v18 }
 0x37b   :  { %628 = vrot.lane.b32.xlu0 %v626_v53, %s2727_s14  ;;  %v738_v53 = vld [vmem:[#allocation4 + $0x38] sm:$0xff] }
 0x3ed   :  { %v629_v27 = vpop.permute.xlu0 %628 }
 0x3ee   :  { %v631_v28 = vsel %vm40_vm3, %v629_v27, %v527_v60 }
 0x3ef   :  { %632 = vst.msk [vmem:[#allocation2 + $0x8] sm:$0xff] %vm389_vm1, %v631_v28  ;;  %726 = vrot.lane.b32.xlu0 %v631_v28, %s2727_s14  ;;  %2564 = vmatmul.mubr.msk.f32.vlgmr.msra.gmra.mxu0 %vm389_vm1, %v631_v28 }
 0x3f0   :  { %863 = vmatpush1.msra.mxu0 %v2853_v20  ;;  %910 = vmatprep.mubr.f32.mxu0 %v2726_v3 }
 0x3f1   :  { %864 = vmatprep.subr.mxu0 %v2860_v21 }
 0x3f2   :  { %865 = vmatpush1.msra.mxu0 %v2875_v24 }
 0x3f3   :  { %866 = vmatprep.subr.mxu0 %v2881_v25 }
 0x3f4   :  { %867 = vmatpush1.msra.mxu0 %v2889_v26 }
 0x3f5   :  { %868 = vmatprep.subr.mxu0 %v2905_v29 }
 0x3f6   :  { %869 = vmatpush1.msra.mxu0 %v2913_v30  ;;  %v3157_v32 = vld [vmem:[#allocation2 + $0x8] sm:$0xff] }
 0x3f7   :  { %870 = vmatprep.subr.mxu0 %v2929_v33  ;;  %1276 = vst.msk [vmem:[#allocation3 + $0x30] sm:$0xff] %vm389_vm1, %v3157_v32 }
 0x3f8   :  { %871 = vmatpush1.msra.mxu0 %v2937_v34 }
 0x3f9   :  { %872 = vmatprep.subr.mxu0 %v2953_v37 }
 0x3fa   :  { %873 = vmatpush1.msra.mxu0 %v2961_v38 }
 0x3fb   :  { %874 = vmatprep.subr.mxu0 %v2977_v41 }
 0x3fc   :  { %875 = vmatpush1.msra.mxu0 %v2985_v42 }
 0x3fd   :  { %876 = vmatprep.subr.mxu0 %v3001_v45 }
 0x3fe   :  { %877 = vmatpush1.msra.mxu0 %v3009_v46 }
 0x3ff   :  { %1070 = vmatprep.subr.mxu0 %v2848_v19 }
 0x461   :  { %v727_v63 = vpop.permute.xlu0 %726 }
 0x4af   :  { %v704_v62 = vpop.f32.mrf.mxu0 }
 0x4b0   :  { %v709_v35 = vadd.f32 %v704_v62, %v3070_v12 }
 0x4b1   :  { %v706_v43 = vpop.f32.mrf.mxu0 }
 0x4b2   :  { %v2565_v36 = vmul.f32 -1.442695, %v709_v35  ;;  %v716_v44 = vadd.f32 %v3097_v31, %v706_v43 }
 0x4b4   :  { %2642 = vpow2.f32 %v2565_v36 }
 0x4c1   :  { %v2643_v39 = vpop.eup %2642 }
 0x4c2   :  { %v713_v56 = vadd.f32 1.0, %v2643_v39 }
 0x4c4   :  { %2644 = vrcp.f32 %v713_v56  ;;  %v3213_v56 = vld [vmem:[%s3921_s2 + $0x18] sm:$0xff] }
 0x4c5   :  { %vm44_vm5 = vcmp.ne.f32.partialorder %v3213_v56, 0.0  ;;  %v2515_v56 = vld [vmem:[%s3921_s2 + $0x18] sm:$0xff] }
 0x4d1   :  { %v2645_v47 = vpop.eup %2644 }
 0x4d2   :  { %v717_v48 = vmul.f32 %v2645_v47, %v716_v44  ;;  %v720_v60 = vsub.f32 1.0, %v2645_v47  ;;  %v729_v12 = vmul.f32 %v2645_v47, %v727_v63 }
 0x4d4   :  { %v718_v54 = vadd.f32 %v717_v48, %v634_v49 }
 0x4d6   :  { %2646 = vtanh.f32 %v718_v54 }
 0x4e3   :  { %v2647_v59 = vpop.eup %2646 }
 0x4e4   :  { %722 = vrot.lane.b32.xlu1 %v2647_v59, %s2727_s14 }
 0x556   :  { %v723_v0 = vpop.permute.xlu1 %722 }
 0x557   :  { %v725_v1 = vmul.f32 %v723_v0, %v720_v60 }
 0x559   :  { %v730_v2 = vadd.f32 %v729_v12, %v725_v1 }
 0x55b   :  { %732 = vrot.lane.b32.xlu1 %v730_v2, %s2727_s14  ;;  %v842_v2 = vld [vmem:[#allocation4 + $0x48] sm:$0xff] }
 0x5cd   :  { %v733_v7 = vpop.permute.xlu1 %732 }
 0x5ce   :  { %v735_v8 = vsel %vm42_vm4, %v733_v7, %v631_v28 }
 0x5cf   :  { %736 = vst.msk [vmem:[#allocation2 + $0x10] sm:$0xff] %vm389_vm1, %v735_v8  ;;  %830 = vrot.lane.b32.xlu1 %v735_v8, %s2727_s14  ;;  %2566 = vmatmul.mubr.msk.f32.vlgmr.msra.gmra.mxu1 %vm389_vm1, %v735_v8 }
 0x5d0   :  { %967 = vmatpush1.msra.mxu1 %v2853_v20  ;;  %1014 = vmatprep.mubr.f32.mxu1 %v2726_v3 }
 0x5d1   :  { %968 = vmatprep.subr.mxu1 %v2860_v21 }
 0x5d2   :  { %969 = vmatpush1.msra.mxu1 %v2875_v24 }
 0x5d3   :  { %970 = vmatprep.subr.mxu1 %v2881_v25 }
 0x5d4   :  { %971 = vmatpush1.msra.mxu1 %v2889_v26 }
 0x5d5   :  { %972 = vmatprep.subr.mxu1 %v2905_v29 }
 0x5d6   :  { %973 = vmatpush1.msra.mxu1 %v2913_v30  ;;  %v3193_v9 = vld [vmem:[#allocation2 + $0x10] sm:$0xff] }
 0x5d7   :  { %974 = vmatprep.subr.mxu1 %v2929_v33  ;;  %1274 = vst.msk [vmem:[#allocation3 + $0x28] sm:$0xff] %vm389_vm1, %v3193_v9 }
 0x5d8   :  { %975 = vmatpush1.msra.mxu1 %v2937_v34 }
 0x5d9   :  { %976 = vmatprep.subr.mxu1 %v2953_v37 }
 0x5da   :  { %977 = vmatpush1.msra.mxu1 %v2961_v38 }
 0x5db   :  { %978 = vmatprep.subr.mxu1 %v2977_v41 }
 0x5dc   :  { %979 = vmatpush1.msra.mxu1 %v2985_v42 }
 0x5dd   :  { %980 = vmatprep.subr.mxu1 %v3001_v45 }
 0x5de   :  { %981 = vmatpush1.msra.mxu1 %v3009_v46 }
 0x5df   :  { %1174 = vmatprep.subr.mxu1 %v2848_v19 }
 0x641   :  { %v831_v62 = vpop.permute.xlu1 %830 }
 0x68f   :  { %v808_v10 = vpop.f32.mrf.mxu1 }
 0x690   :  { %v813_v11 = vadd.f32 %v808_v10, %v3074_v23 }
 0x691   :  { %v810_v4 = vpop.f32.mrf.mxu1 }
 0x692   :  { %v2567_v13 = vmul.f32 -1.442695, %v813_v11  ;;  %v820_v17 = vadd.f32 %v3097_v31, %v810_v4  ;;  %v3248_v4 = vld [vmem:[%s3921_s2 + $0x20] sm:$0xff] }
 0x693   :  { %vm46_vm6 = vcmp.ne.f32.partialorder %v3248_v4, 0.0  ;;  %v2516_v4 = vld [vmem:[%s3921_s2 + $0x20] sm:$0xff] }
 0x694   :  { %2648 = vpow2.f32 %v2567_v13 }
 0x6a1   :  { %v2649_v14 = vpop.eup %2648 }
 0x6a2   :  { %v817_v15 = vadd.f32 1.0, %v2649_v14 }
 0x6a4   :  { %2650 = vrcp.f32 %v817_v15 }
 0x6b1   :  { %v2651_v18 = vpop.eup %2650 }
 0x6b2   :  { %v821_v52 = vmul.f32 %v2651_v18, %v820_v17  ;;  %v824_v19 = vsub.f32 1.0, %v2651_v18  ;;  %v833_v23 = vmul.f32 %v2651_v18, %v831_v62 }
 0x6b4   :  { %v822_v27 = vadd.f32 %v821_v52, %v738_v53 }
 0x6b6   :  { %2652 = vtanh.f32 %v822_v27 }
 0x6c3   :  { %v2653_v28 = vpop.eup %2652 }
 0x6c4   :  { %826 = vrot.lane.b32.xlu0 %v2653_v28, %s2727_s14  ;;  %v3283_v28 = vld [vmem:[%s3921_s2 + $0x28] sm:$0xff] }
 0x6c5   :  { %vm48_vm7 = vcmp.ne.f32.partialorder %v3283_v28, 0.0 }
 0x736   :  { %v827_v35 = vpop.permute.xlu0 %826 }
 0x737   :  { %v829_v36 = vmul.f32 %v827_v35, %v824_v19 }
 0x739   :  { %v834_v39 = vadd.f32 %v833_v23, %v829_v36 }
 0x73b   :  { %836 = vrot.lane.b32.xlu0 %v834_v39, %s2727_s14 }
 0x7ad   :  { %v837_v43 = vpop.permute.xlu0 %836 }
 0x7ae   :  { %v839_v44 = vsel %vm44_vm5, %v837_v43, %v735_v8 }
 0x7af   :  { %840 = vst.msk [vmem:[#allocation2 + $0x18] sm:$0xff] %vm389_vm1, %v839_v44  ;;  %934 = vrot.lane.b32.xlu0 %v839_v44, %s2727_s14  ;;  %2568 = vmatmul.mubr.msk.f32.vlgmr.msra.gmra.mxu0 %vm389_vm1, %v839_v44 }
 0x7b0   :  { %1071 = vmatpush1.msra.mxu0 %v2853_v20  ;;  %1118 = vmatprep.mubr.f32.mxu0 %v2726_v3 }
 0x7b1   :  { %1072 = vmatprep.subr.mxu0 %v2860_v21 }
 0x7b2   :  { %1073 = vmatpush1.msra.mxu0 %v2875_v24 }
 0x7b3   :  { %1074 = vmatprep.subr.mxu0 %v2881_v25 }
 0x7b4   :  { %1075 = vmatpush1.msra.mxu0 %v2889_v26 }
 0x7b5   :  { %1076 = vmatprep.subr.mxu0 %v2905_v29 }
 0x7b6   :  { %1077 = vmatpush1.msra.mxu0 %v2913_v30  ;;  %v3229_v47 = vld [vmem:[#allocation2 + $0x18] sm:$0xff] }
 0x7b7   :  { %1078 = vmatprep.subr.mxu0 %v2929_v33  ;;  %1272 = vst.msk [vmem:[#allocation3 + $0x20] sm:$0xff] %vm389_vm1, %v3229_v47 }
 0x7b8   :  { %1079 = vmatpush1.msra.mxu0 %v2937_v34 }
 0x7b9   :  { %1080 = vmatprep.subr.mxu0 %v2953_v37 }
 0x7ba   :  { %1081 = vmatpush1.msra.mxu0 %v2961_v38 }
 0x7bb   :  { %1082 = vmatprep.subr.mxu0 %v2977_v41 }
 0x7bc   :  { %1083 = vmatpush1.msra.mxu0 %v2985_v42 }
 0x7bd   :  { %1084 = vmatprep.subr.mxu0 %v3001_v45 }
 0x7be   :  { %1085 = vmatpush1.msra.mxu0 %v3009_v46 }
 0x821   :  { %v935_v11 = vpop.permute.xlu0 %934 }
 0x86f   :  { %v912_v48 = vpop.f32.mrf.mxu0 }
 0x870   :  { %v917_v49 = vadd.f32 %v912_v48, %v3078_v40 }
 0x871   :  { %v914_v63 = vpop.f32.mrf.mxu0 }
 0x872   :  { %v2569_v54 = vmul.f32 -1.442695, %v917_v49  ;;  %v924_v0 = vadd.f32 %v3097_v31, %v914_v63 }
 0x874   :  { %2654 = vpow2.f32 %v2569_v54 }
 0x881   :  { %v2655_v59 = vpop.eup %2654 }
 0x882   :  { %v921_v60 = vadd.f32 1.0, %v2655_v59 }
 0x884   :  { %2656 = vrcp.f32 %v921_v60  ;;  %v1050_v60 = vld [vmem:[#allocation4 + $0x68] sm:$0xff] }
 0x891   :  { %v2657_v12 = vpop.eup %2656 }
 0x892   :  { %v925_v1 = vmul.f32 %v2657_v12, %v924_v0  ;;  %v928_v10 = vsub.f32 1.0, %v2657_v12  ;;  %v937_v40 = vmul.f32 %v2657_v12, %v935_v11  ;;  %v3306_v11 = vld [vmem:[%s3921_s2 + $0x30] sm:$0xff] }
 0x893   :  { %vm50_vm8 = vcmp.ne.f32.partialorder %v3306_v11, 0.0 }
 0x894   :  { %v926_v7 = vadd.f32 %v925_v1, %v842_v2 }
 0x896   :  { %2658 = vtanh.f32 %v926_v7 }
 0x8a3   :  { %v2659_v8 = vpop.eup %2658 }
 0x8a4   :  { %930 = vrot.lane.b32.xlu1 %v2659_v8, %s2727_s14 }
 0x916   :  { %v931_v13 = vpop.permute.xlu1 %930 }
 0x917   :  { %v933_v14 = vmul.f32 %v931_v13, %v928_v10 }
 0x919   :  { %v938_v15 = vadd.f32 %v937_v40, %v933_v14  ;;  %v1301_v40 = vld [vmem:[%s3922_s5 + $0x70] sm:$0xff] }
 0x91b   :  { %940 = vrot.lane.b32.xlu1 %v938_v15, %s2727_s14  ;;  %v1300_v15 = vld [vmem:[%s3922_s5 + $0x68] sm:$0xff] }
 0x98d   :  { %v941_v17 = vpop.permute.xlu1 %940 }
 0x98e   :  { %v943_v18 = vsel %vm46_vm6, %v941_v17, %v839_v44  ;;  %v1299_v17 = vld [vmem:[%s3922_s5 + $0x60] sm:$0xff] }
 0x98f   :  { %944 = vst.msk [vmem:[#allocation2 + $0x20] sm:$0xff] %vm389_vm1, %v943_v18  ;;  %1038 = vrot.lane.b32.xlu1 %v943_v18, %s2727_s14  ;;  %2570 = vmatmul.mubr.msk.f32.vlgmr.msra.gmra.mxu1 %vm389_vm1, %v943_v18 }
 0x990   :  { %1175 = vmatpush1.msra.mxu1 %v2853_v20  ;;  %1222 = vmatprep.mubr.f32.mxu1 %v2726_v3 }
 0x991   :  { %1176 = vmatprep.subr.mxu1 %v2860_v21 }
 0x992   :  { %1177 = vmatpush1.msra.mxu1 %v2875_v24 }
 0x993   :  { %1178 = vmatprep.subr.mxu1 %v2881_v25 }
 0x994   :  { %1179 = vmatpush1.msra.mxu1 %v2889_v26 }
 0x995   :  { %1180 = vmatprep.subr.mxu1 %v2905_v29 }
 0x996   :  { %1181 = vmatpush1.msra.mxu1 %v2913_v30  ;;  %v3264_v52 = vld [vmem:[#allocation2 + $0x20] sm:$0xff] }
 0x997   :  { %1182 = vmatprep.subr.mxu1 %v2929_v33  ;;  %1270 = vst.msk [vmem:[#allocation3 + $0x18] sm:$0xff] %vm389_vm1, %v3264_v52 }
 0x998   :  { %1183 = vmatpush1.msra.mxu1 %v2937_v34 }
 0x999   :  { %1184 = vmatprep.subr.mxu1 %v2953_v37  ;;  %v946_v37 = vld [vmem:[#allocation4 + $0x58] sm:$0xff] }
 0x99a   :  { %1185 = vmatpush1.msra.mxu1 %v2961_v38 }
 0x99b   :  { %1186 = vmatprep.subr.mxu1 %v2977_v41 }
 0x99c   :  { %1187 = vmatpush1.msra.mxu1 %v2985_v42 }
 0x99d   :  { %1188 = vmatprep.subr.mxu1 %v3001_v45 }
 0x99e   :  { %1189 = vmatpush1.msra.mxu1 %v3009_v46 }
 0xa01   :  { %v1039_v45 = vpop.permute.xlu1 %1038 }
 0xa4f   :  { %v1016_v20 = vpop.f32.mrf.mxu1 }
 0xa50   :  { %v1021_v21 = vadd.f32 %v1016_v20, %v3082_v58  ;;  %v1297_v20 = vld [vmem:[%s3922_s5 + $0x50] sm:$0xff] }
 0xa51   :  { %v1018_v29 = vpop.f32.mrf.mxu1 }
 0xa52   :  { %v2571_v24 = vmul.f32 -1.442695, %v1021_v21  ;;  %v1028_v30 = vadd.f32 %v3097_v31, %v1018_v29  ;;  %v1296_v21 = vld [vmem:[%s3922_s5 + $0x48] sm:$0xff] }
 0xa53   :  { %v1292_v29 = vld [vmem:[%s3922_s5 + $0x28] sm:$0xff] }
 0xa54   :  { %2660 = vpow2.f32 %v2571_v24  ;;  %v1295_v24 = vld [vmem:[%s3922_s5 + $0x40] sm:$0xff] }
 0xa61   :  { %v2661_v25 = vpop.eup %2660 }
 0xa62   :  { %v1025_v26 = vadd.f32 1.0, %v2661_v25  ;;  %v1294_v25 = vld [vmem:[%s3922_s5 + $0x38] sm:$0xff] }
 0xa64   :  { %2662 = vrcp.f32 %v1025_v26  ;;  %v1293_v26 = vld [vmem:[%s3922_s5 + $0x30] sm:$0xff] }
 0xa71   :  { %v2663_v33 = vpop.eup %2662 }
 0xa72   :  { %v1029_v34 = vmul.f32 %v2663_v33, %v1028_v30  ;;  %v1032_v42 = vsub.f32 1.0, %v2663_v33  ;;  %v1041_v58 = vmul.f32 %v2663_v33, %v1039_v45  ;;  %v1291_v33 = vld [vmem:[%s3922_s5 + $0x20] sm:$0xff] }
 0xa74   :  { %v1030_v38 = vadd.f32 %v1029_v34, %v946_v37  ;;  %v1290_v34 = vld [vmem:[%s3922_s5 + $0x18] sm:$0xff]  ;;  %v1289_v37 = vld [vmem:[%s3922_s5 + $0x10] sm:$0xff] }
 0xa76   :  { %2664 = vtanh.f32 %v1030_v38  ;;  %v1288_v38 = vld [vmem:[%s3922_s5 + $0x8] sm:$0xff] }
 0xa83   :  { %v2665_v41 = vpop.eup %2664 }
 0xa84   :  { %1034 = vrot.lane.b32.xlu0 %v2665_v41, %s2727_s14  ;;  %v1287_v41 = vld [vmem:[%s3922_s5] sm:$0xff] }
 0xaf6   :  { %v1035_v46 = vpop.permute.xlu0 %1034 }
 0xaf7   :  { %v1037_v53 = vmul.f32 %v1035_v46, %v1032_v42 }
 0xaf9   :  { %v1042_v27 = vadd.f32 %v1041_v58, %v1037_v53  ;;  %v1154_v53 = vld [vmem:[#allocation4 + $0x78] sm:$0xff] }
 0xafb   :  { %1044 = vrot.lane.b32.xlu0 %v1042_v27, %s2727_s14 }
 0xb6d   :  { %v1045_v19 = vpop.permute.xlu0 %1044 }
 0xb6e   :  { %v1047_v62 = vsel %vm48_vm7, %v1045_v19, %v943_v18  ;;  %v1298_v18 = vld [vmem:[%s3922_s5 + $0x58] sm:$0xff] }
 0xb6f   :  { %1048 = vst.msk [vmem:[#allocation2 + $0x28] sm:$0xff] %vm389_vm1, %v1047_v62  ;;  %1142 = vrot.lane.b32.xlu0 %v1047_v62, %s2727_s14  ;;  %2572 = vmatmul.mubr.msk.f32.vlgmr.msra.gmra.mxu0 %vm389_vm1, %v1047_v62 }
 0xb70   :  { %1415 = vmatprep.mubr.f32.mxu0 %v2726_v3 }
 0xb76   :  { %v3292_v35 = vld [vmem:[#allocation2 + $0x28] sm:$0xff] }
 0xb77   :  { %1268 = vst.msk [vmem:[#allocation3 + $0x10] sm:$0xff] %vm389_vm1, %v3292_v35 }
 0xbe1   :  { %v1143_v1 = vpop.permute.xlu0 %1142 }
 0xc2f   :  { %v1120_v23 = vpop.f32.mrf.mxu0 }
 0xc30   :  { %v1125_v36 = vadd.f32 %v1120_v23, %v3086_v6  ;;  %v1302_v6 = vld [vmem:[%s3922_s5 + $0x78] sm:$0xff] }
 0xc31   :  { %v1122_v48 = vpop.f32.mrf.mxu0  ;;  %1504 = vmatprep.subr.mxu1 %v1302_v6  ;;  %v1322_v23 = vld [vmem:[%s3923_s6 + $0x58] sm:$0xff]  ;;  %v1315_v6 = vld [vmem:[%s3923_s6 + $0x20] sm:$0xff] }
 0xc32   :  { %v2573_v39 = vmul.f32 -1.442695, %v1125_v36  ;;  %v1132_v49 = vadd.f32 %v3097_v31, %v1122_v48  ;;  %v1321_v36 = vld [vmem:[%s3923_s6 + $0x50] sm:$0xff] }
 0xc34   :  { %2666 = vpow2.f32 %v2573_v39 }
 0xc41   :  { %v2667_v43 = vpop.eup %2666 }
 0xc42   :  { %v1129_v44 = vadd.f32 1.0, %v2667_v43  ;;  %v1320_v43 = vld [vmem:[%s3923_s6 + $0x48] sm:$0xff] }
 0xc44   :  { %2668 = vrcp.f32 %v1129_v44 }
 0xc51   :  { %v2669_v54 = vpop.eup %2668 }
 0xc52   :  { %v1133_v59 = vmul.f32 %v2669_v54, %v1132_v49  ;;  %v1136_v12 = vsub.f32 1.0, %v2669_v54  ;;  %v1145_v7 = vmul.f32 %v2669_v54, %v1143_v1  ;;  %v1319_v49 = vld [vmem:[%s3923_s6 + $0x40] sm:$0xff]  ;;  %v1314_v1 = vld [vmem:[%s3923_s6 + $0x18] sm:$0xff] }
 0xc54   :  { %v1134_v63 = vadd.f32 %v1133_v59, %v1050_v60  ;;  %v1318_v60 = vld [vmem:[%s3923_s6 + $0x38] sm:$0xff] }
 0xc56   :  { %2670 = vtanh.f32 %v1134_v63  ;;  %v1317_v63 = vld [vmem:[%s3923_s6 + $0x30] sm:$0xff] }
 0xc63   :  { %v2671_v0 = vpop.eup %2670 }
 0xc64   :  { %1138 = vrot.lane.b32.xlu1 %v2671_v0, %s2727_s14  ;;  %v1316_v0 = vld [vmem:[%s3923_s6 + $0x28] sm:$0xff] }
 0xcd6   :  { %v1139_v2 = vpop.permute.xlu1 %1138 }
 0xcd7   :  { %v1141_v8 = vmul.f32 %v1139_v2, %v1136_v12  ;;  %v1313_v2 = vld [vmem:[%s3923_s6 + $0x10] sm:$0xff] }
 0xcd9   :  { %v1146_v10 = vadd.f32 %v1145_v7, %v1141_v8  ;;  %v1312_v7 = vld [vmem:[%s3923_s6 + $0x8] sm:$0xff]  ;;  %v1311_v8 = vld [vmem:[%s3923_s6] sm:$0xff] }
 0xcdb   :  { %1148 = vrot.lane.b32.xlu1 %v1146_v10, %s2727_s14  ;;  %v3441_v10 = vld [vmem:[%s3918_s7 + $0xf8] sm:$0xff] }
 0xd4d   :  { %v1149_v13 = vpop.permute.xlu1 %1148 }
 0xd4e   :  { %v3314_v14 = vsel %vm50_vm8, %v1149_v13, %v1047_v62  ;;  %v1325_v62 = vld [vmem:[%s3923_s6 + $0x70] sm:$0xff] }
 0xd4f   :  { %1152 = vst.msk [vmem:[#allocation2 + $0x30] sm:$0xff] %vm389_vm1, %v3314_v14  ;;  %1246 = vrot.lane.b32.xlu1 %v3314_v14, %s2727_s14  ;;  %2574 = vmatmul.mubr.msk.f32.vlgmr.msra.gmra.mxu1 %vm389_vm1, %v3314_v14  ;;  %v3447_v13 = vld [vmem:[%s3918_s7 + $0xf0] sm:$0xff] }
 0xd50   :  { %1505 = vmatpush1.msra.mxu1 %v1301_v40  ;;  %1552 = vmatprep.mubr.f32.mxu1 %v2726_v3  ;;  %v3454_v40 = vld [vmem:[%s3918_s7 + $0xe8] sm:$0xff] }
 0xd51   :  { %1506 = vmatprep.subr.mxu1 %v1300_v15  ;;  %v3459_v15 = vld [vmem:[%s3918_s7 + $0xe0] sm:$0xff] }
 0xd52   :  { %1507 = vmatpush1.msra.mxu1 %v1299_v17  ;;  %v3466_v17 = vld [vmem:[%s3918_s7 + $0xd8] sm:$0xff] }
 0xd53   :  { %1508 = vmatprep.subr.mxu1 %v1298_v18  ;;  %v3471_v18 = vld [vmem:[%s3918_s7 + $0xd0] sm:$0xff] }
 0xd54   :  { %1509 = vmatpush1.msra.mxu1 %v1297_v20  ;;  %v3478_v20 = vld [vmem:[%s3918_s7 + $0xc8] sm:$0xff] }
 0xd55   :  { %1510 = vmatprep.subr.mxu1 %v1296_v21  ;;  %v3483_v21 = vld [vmem:[%s3918_s7 + $0xc0] sm:$0xff] }
 0xd56   :  { %1511 = vmatpush1.msra.mxu1 %v1295_v24  ;;  %v1285_v30 = vld [vmem:[#allocation2 + $0x30] sm:$0xff]  ;;  %v3490_v24 = vld [vmem:[%s3918_s7 + $0xb8] sm:$0xff] }
 0xd57   :  { %1512 = vmatprep.subr.mxu1 %v1294_v25  ;;  %1266 = vst.msk [vmem:[#allocation3 + $0x8] sm:$0xff] %vm389_vm1, %v1285_v30  ;;  %v3495_v25 = vld [vmem:[%s3918_s7 + $0xb0] sm:$0xff] }
 0xd58   :  { %1513 = vmatpush1.msra.mxu1 %v1293_v26  ;;  %v3502_v26 = vld [vmem:[%s3918_s7 + $0xa8] sm:$0xff] }
 0xd59   :  { %1514 = vmatprep.subr.mxu1 %v1292_v29  ;;  %v3507_v29 = vld [vmem:[%s3918_s7 + $0xa0] sm:$0xff] }
 0xd5a   :  { %1515 = vmatpush1.msra.mxu1 %v1291_v33  ;;  %v3519_v33 = vld [vmem:[%s3918_s7 + $0x90] sm:$0xff] }
 0xd5b   :  { %1516 = vmatprep.subr.mxu1 %v1290_v34  ;;  %v3526_v34 = vld [vmem:[%s3918_s7 + $0x88] sm:$0xff] }
 0xd5c   :  { %1517 = vmatpush1.msra.mxu1 %v1289_v37  ;;  %v3531_v37 = vld [vmem:[%s3918_s7 + $0x80] sm:$0xff] }
 0xd5d   :  { %1518 = vmatprep.subr.mxu1 %v1288_v38  ;;  %v3539_v38 = vld [vmem:[%s3921_s2 + $0x38] sm:$0xff] }
 0xd5e   :  { %1519 = vmatpush1.msra.mxu1 %v1287_v41  ;;  %vm52_vm9 = vcmp.ne.f32.partialorder %v3539_v38, 0.0 }
 0xd5f   :  { %2584 = vmatmul.mubr.msk.f32.vlgmr.msra.gmra.mxu1 %vm389_vm1, %v3120_v61  ;;  %1790 = vmatprep.subr.mxu1 %v3441_v10 }
 0xd60   :  { %1558 = vmatprep.mubr.f32.mxu1 %v2726_v3  ;;  %1791 = vmatpush1.msra.mxu1 %v3447_v13 }
 0xd61   :  { %1792 = vmatprep.subr.mxu1 %v3454_v40 }
 0xd62   :  { %1793 = vmatpush1.msra.mxu1 %v3459_v15 }
 0xd63   :  { %2585 = vmatmul.mubr.msk.f32.gmra.mxu1 %vm389_vm1, %v3157_v32  ;;  %1794 = vmatprep.subr.mxu1 %v3466_v17 }
 0xd64   :  { %1564 = vmatprep.mubr.f32.mxu1 %v2726_v3  ;;  %1795 = vmatpush1.msra.mxu1 %v3471_v18 }
 0xd65   :  { %1796 = vmatprep.subr.mxu1 %v3478_v20 }
 0xd66   :  { %1797 = vmatpush1.msra.mxu1 %v3483_v21 }
 0xd67   :  { %2586 = vmatmul.mubr.msk.f32.gmra.mxu1 %vm389_vm1, %v3193_v9  ;;  %1798 = vmatprep.subr.mxu1 %v3490_v24 }
 0xd68   :  { %1570 = vmatprep.mubr.f32.mxu1 %v2726_v3  ;;  %1799 = vmatpush1.msra.mxu1 %v3495_v25 }
 0xd69   :  { %1800 = vmatprep.subr.mxu1 %v3502_v26 }
 0xd6a   :  { %1801 = vmatpush1.msra.mxu1 %v3507_v29 }
 0xd6b   :  { %2587 = vmatmul.mubr.msk.f32.gmra.mxu1 %vm389_vm1, %v3229_v47 }
 0xd6c   :  { %1576 = vmatprep.mubr.f32.mxu1 %v2726_v3 }
 0xd6f   :  { %2588 = vmatmul.mubr.msk.f32.gmra.mxu1 %vm389_vm1, %v3264_v52 }
 0xd70   :  { %1582 = vmatprep.mubr.f32.mxu1 %v2726_v3 }
 0xd73   :  { %2589 = vmatmul.mubr.msk.f32.gmra.mxu1 %vm389_vm1, %v3292_v35  ;;  %v1323_v35 = vld [vmem:[%s3923_s6 + $0x60] sm:$0xff] }
 0xd74   :  { %1588 = vmatprep.mubr.f32.mxu1 %v2726_v3 }
 0xd77   :  { %2590 = vmatmul.mubr.msk.f32.gmra.mxu1 %vm389_vm1, %v1285_v30  ;;  %v3514_v30 = vld [vmem:[%s3918_s7 + $0x98] sm:$0xff]  ;;  %s2728_s7 = smov 96  }
 0xd78   :  { %1594 = vmatprep.mubr.f32.mxu1 %v2726_v3  ;;  %1802 = vmatprep.subr.mxu1 %v3514_v30 }
 0xd79   :  { %1803 = vmatpush1.msra.mxu1 %v3519_v33 }
 0xd7a   :  { %1804 = vmatprep.subr.mxu1 %v3526_v34 }
 0xd7b   :  { %1805 = vmatpush1.msra.mxu1 %v3531_v37 }
 0xd7c   :  { %1998 = vmatprep.subr.mxu1 %v3441_v10 }
 0xdc1   :  { %v1247_v44 = vpop.permute.xlu1 %1246 }
 0xe0f   :  { %v1224_v61 = vpop.f32.mrf.mxu1 }
 0xe10   :  { %v1229_v32 = vadd.f32 %v1224_v61, %v3090_v16  ;;  %v1326_v16 = vld [vmem:[%s3923_s6 + $0x78] sm:$0xff] }
 0xe11   :  { %v1226_v52 = vpop.f32.mrf.mxu1  ;;  %1367 = vmatprep.subr.mxu0 %v1326_v16 }
 0xe12   :  { %v2575_v9 = vmul.f32 -1.442695, %v1229_v32  ;;  %v1236_v45 = vadd.f32 %v3097_v31, %v1226_v52  ;;  %1368 = vmatpush1.msra.mxu0 %v1325_v62  ;;  %v1324_v31 = vld [vmem:[%s3923_s6 + $0x68] sm:$0xff]  ;;  %v1307_v52 = vld [vmem:[#allocation3 + $0x20] sm:$0xff] }
 0xe13   :  { %1369 = vmatprep.subr.mxu0 %v1324_v31 }
 0xe14   :  { %2672 = vpow2.f32 %v2575_v9  ;;  %1370 = vmatpush1.msra.mxu0 %v1323_v35 }
 0xe15   :  { %1371 = vmatprep.subr.mxu0 %v1322_v23  ;;  %v2592_v23 = vld [vmem:[%s3919_s8 + $0x2] sm:$0x3] }
 0xe16   :  { %1372 = vmatpush1.msra.mxu0 %v1321_v36  ;;  %v3607_v36 = vrot.slane %v2592_v23, %v364_v55 }
 0xe17   :  { %1373 = vmatprep.subr.mxu0 %v1320_v43 }
 0xe18   :  { %1374 = vmatpush1.msra.mxu0 %v1319_v49 }
 0xe19   :  { %1375 = vmatprep.subr.mxu0 %v1318_v60 }
 0xe1a   :  { %1376 = vmatpush1.msra.mxu0 %v1317_v63 }
 0xe1b   :  { %1377 = vmatprep.subr.mxu0 %v1316_v0 }
 0xe1c   :  { %1378 = vmatpush1.msra.mxu0 %v1315_v6 }
 0xe1d   :  { %1379 = vmatprep.subr.mxu0 %v1314_v1 }
 0xe1e   :  { %1380 = vmatpush1.msra.mxu0 %v1313_v2 }
 0xe1f   :  { %1381 = vmatprep.subr.mxu0 %v1312_v7 }
 0xe20   :  { %1382 = vmatpush1.msra.mxu0 %v1311_v8 }
 0xe21   :  { %v2673_v47 = vpop.eup %2672  ;;  %1689 = vmatprep.subr.mxu0 %v3441_v10 }
 0xe22   :  { %v1233_v42 = vadd.f32 1.0, %v2673_v47  ;;  %v1305_v47 = vld [vmem:[#allocation3 + $0x10] sm:$0xff] }
 0xe24   :  { %2674 = vrcp.f32 %v1233_v42  ;;  %v1306_v42 = vld [vmem:[#allocation3 + $0x18] sm:$0xff] }
 0xe31   :  { %v2675_v46 = vpop.eup %2674 }
 0xe32   :  { %v1237_v58 = vmul.f32 %v2675_v46, %v1236_v45  ;;  %v1240_v39 = vsub.f32 1.0, %v2675_v46  ;;  %v1249_v54 = vmul.f32 %v2675_v46, %v1247_v44  ;;  %v1308_v45 = vld [vmem:[#allocation3 + $0x28] sm:$0xff]  ;;  %v1309_v46 = vld [vmem:[#allocation3 + $0x30] sm:$0xff] }
 0xe34   :  { %v1238_v27 = vadd.f32 %v1237_v58, %v1154_v53  ;;  %v1310_v58 = vld [vmem:[#allocation3 + $0x38] sm:$0xff]  ;;  %v1554_v53 = vpop.f32.mrf.mxu1 }
 0xe36   :  { %2676 = vtanh.f32 %v1238_v27  ;;  %v1556_v27 = vpop.f32.mrf.mxu1 }
 0xe43   :  { %v2677_v19 = vpop.eup %2676 }
 0xe44   :  { %1242 = vrot.lane.b32.xlu0 %v2677_v19, %s2727_s14  ;;  %v1560_v19 = vpop.f32.mrf.mxu1 }
 0xe46   :  { %v1562_v16 = vpop.f32.mrf.mxu1 }
 0xe48   :  { %v1566_v62 = vpop.f32.mrf.mxu1 }
 0xe4a   :  { %v1568_v31 = vpop.f32.mrf.mxu1 }
 0xe4c   :  { %v1572_v35 = vpop.f32.mrf.mxu1 }
 0xeb6   :  { %v1243_v48 = vpop.permute.xlu0 %1242 }
 0xeb7   :  { %v1245_v59 = vmul.f32 %v1243_v48, %v1240_v39  ;;  %v1574_v39 = vpop.f32.mrf.mxu1  ;;  %v1611_v48 = vrot.slane %v2592_v23, %v368_v51 }
 0xeb9   :  { %v1250_v12 = vadd.f32 %v1249_v54, %v1245_v59  ;;  %v1578_v60 = vpop.f32.mrf.mxu1 }
 0xebb   :  { %1252 = vrot.lane.b32.xlu0 %v1250_v12, %s2727_s14  ;;  %v1580_v2 = vpop.f32.mrf.mxu1 }
 0xf2d   :  { %v1253_v41 = vpop.permute.xlu0 %1252 }
 0xf2e   :  { %v3545_v61 = vsel %vm52_vm9, %v1253_v41, %v3314_v14  ;;  %v1304_v14 = vld [vmem:[#allocation3 + $0x8] sm:$0xff] }
 0xf2f   :  { %1256 = vst.msk [vmem:[#allocation2 + $0x38] sm:$0xff] %vm389_vm1, %v3545_v61 }
 0xf36   :  { %v1263_v32 = vld [vmem:[#allocation2 + $0x38] sm:$0xff] }
 0xf37   :  { %1264 = vst.msk [vmem:[#allocation3] sm:$0xff] %vm389_vm1, %v1263_v32  ;;  %2591 = vmatmul.mubr.msk.f32.gmra.mxu1 %vm389_vm1, %v1263_v32 }
 0xf38   :  { %1838 = vmatprep.mubr.f32.mxu1 %v2726_v3 }
 0xf3e   :  { %v1303_v9 = vld [vmem:[#allocation3] sm:$0xff] }
 0xf3f   :  { %2576 = vmatmul.mubr.msk.f32.vlgmr.msra.gmra.mxu0 %vm389_vm1, %v1303_v9  ;;  %v1584_v9 = vpop.f32.mrf.mxu1 }
 0xf40   :  { %1690 = vmatpush1.msra.mxu0 %v3447_v13  ;;  %1421 = vmatprep.mubr.f32.mxu0 %v2726_v3 }
 0xf41   :  { %1691 = vmatprep.subr.mxu0 %v3454_v40 }
 0xf42   :  { %1692 = vmatpush1.msra.mxu0 %v3459_v15 }
 0xf43   :  { %2577 = vmatmul.mubr.msk.f32.gmra.mxu0 %vm389_vm1, %v1304_v14  ;;  %1693 = vmatprep.subr.mxu0 %v3466_v17 }
 0xf44   :  { %1427 = vmatprep.mubr.f32.mxu0 %v2726_v3  ;;  %1694 = vmatpush1.msra.mxu0 %v3471_v18 }
 0xf45   :  { %1695 = vmatprep.subr.mxu0 %v3478_v20 }
 0xf46   :  { %1696 = vmatpush1.msra.mxu0 %v3483_v21 }
 0xf47   :  { %2578 = vmatmul.mubr.msk.f32.gmra.mxu0 %vm389_vm1, %v1305_v47  ;;  %1697 = vmatprep.subr.mxu0 %v3490_v24 }
 0xf48   :  { %1433 = vmatprep.mubr.f32.mxu0 %v2726_v3  ;;  %1698 = vmatpush1.msra.mxu0 %v3495_v25 }
 0xf49   :  { %1699 = vmatprep.subr.mxu0 %v3502_v26 }
 0xf4a   :  { %1700 = vmatpush1.msra.mxu0 %v3507_v29 }
 0xf4b   :  { %2579 = vmatmul.mubr.msk.f32.gmra.mxu0 %vm389_vm1, %v1306_v42  ;;  %1701 = vmatprep.subr.mxu0 %v3514_v30 }
 0xf4c   :  { %1439 = vmatprep.mubr.f32.mxu0 %v2726_v3  ;;  %1702 = vmatpush1.msra.mxu0 %v3519_v33 }
 0xf4d   :  { %1703 = vmatprep.subr.mxu0 %v3526_v34 }
 0xf4e   :  { %1704 = vmatpush1.msra.mxu0 %v3531_v37 }
 0xf4f   :  { %2580 = vmatmul.mubr.msk.f32.gmra.mxu0 %vm389_vm1, %v1307_v52  ;;  %1894 = vmatprep.subr.mxu0 %v3441_v10 }
 0xf50   :  { %1445 = vmatprep.mubr.f32.mxu0 %v2726_v3 }
 0xf53   :  { %2581 = vmatmul.mubr.msk.f32.gmra.mxu0 %vm389_vm1, %v1308_v45 }
 0xf54   :  { %1451 = vmatprep.mubr.f32.mxu0 %v2726_v3 }
 0xf57   :  { %2582 = vmatmul.mubr.msk.f32.gmra.mxu0 %vm389_vm1, %v1309_v46 }
 0xf58   :  { %1457 = vmatprep.mubr.f32.mxu0 %v2726_v3 }
 0xf5b   :  { %2583 = vmatmul.mubr.msk.f32.gmra.mxu0 %vm389_vm1, %v1310_v58  ;;  %v1586_v58 = vpop.f32.mrf.mxu1 }
 0xf5c   :  { %1737 = vmatprep.mubr.f32.mxu0 %v2726_v3 }
 0xf5d   :  { %v1590_v23 = vpop.f32.mrf.mxu1 }
 0xf5f   :  { %1738 = vmatmul.mubr.f32.vlgmr.msra.gmra.mxu0 %v2726_v3 }
 0xf60   :  { %1895 = vmatpush1.msra.mxu0 %v3447_v13  ;;  %1942 = vmatprep.mubr.f32.mxu0 %v2726_v3 }
 0xf61   :  { %1896 = vmatprep.subr.mxu0 %v3454_v40 }
 0xf62   :  { %1897 = vmatpush1.msra.mxu0 %v3459_v15 }
 0xf63   :  { %1898 = vmatprep.subr.mxu0 %v3466_v17 }
 0xf64   :  { %1899 = vmatpush1.msra.mxu0 %v3471_v18 }
 0xf65   :  { %1900 = vmatprep.subr.mxu0 %v3478_v20 }
 0xf66   :  { %1901 = vmatpush1.msra.mxu0 %v3483_v21 }
 0xf67   :  { %1902 = vmatprep.subr.mxu0 %v3490_v24 }
 0xf68   :  { %1903 = vmatpush1.msra.mxu0 %v3495_v25 }
 0xf69   :  { %1904 = vmatprep.subr.mxu0 %v3502_v26 }
 0xf6a   :  { %1905 = vmatpush1.msra.mxu0 %v3507_v29 }
 0xf6b   :  { %1906 = vmatprep.subr.mxu0 %v3514_v30 }
 0xf6c   :  { %1907 = vmatpush1.msra.mxu0 %v3519_v33 }
 0xf6d   :  { %1908 = vmatprep.subr.mxu0 %v3526_v34 }
 0xf6e   :  { %1909 = vmatpush1.msra.mxu0 %v3531_v37 }
 0xf6f   :  { %2102 = vmatprep.subr.mxu0 %v3441_v10 }
 0xfff   :  { %v1417_v43 = vpop.f32.mrf.mxu0 }
0x1000   :  { %v1555_v44 = vadd.f32 %v1554_v53, %v1417_v43 }
0x1001   :  { %v1419_v49 = vpop.f32.mrf.mxu0 }
0x1002   :  { %v1614_v54 = vadd.f32 %v3607_v36, %v1555_v44  ;;  %v1557_v59 = vadd.f32 %v1556_v27, %v1419_v49 }
0x1003   :  { %v1423_v63 = vpop.f32.mrf.mxu0 }
0x1004   :  { %v1615_v0 = vadd.f32 %v1611_v48, %v1557_v59  ;;  %v1561_v6 = vadd.f32 %v1560_v19, %v1423_v63  ;;  %v1592_v63 = vpop.f32.mrf.mxu1 }
0x1005   :  { %v1425_v12 = vpop.f32.mrf.mxu0 }
0x1006   :  { %1631 = vst.msk [vmem:[#allocation4 + $0x8] sm:$0xff] %vm389_vm1, %v1615_v0  ;;  %v3614_v55 = vadd.f32 %v3607_v36, %v1561_v6  ;;  %v1563_v1 = vadd.f32 %v1562_v16, %v1425_v12  ;;  %v1596_v12 = vpop.f32.mrf.mxu1 }
0x1007   :  { %v1429_v7 = vpop.f32.mrf.mxu0 }
0x1008   :  { %v1617_v8 = vadd.f32 %v1611_v48, %v1563_v1  ;;  %v1567_v50 = vadd.f32 %v1566_v62, %v1429_v7 }
0x1009   :  { %v1431_v51 = vpop.f32.mrf.mxu0 }
0x100a   :  { %1633 = vst.msk [vmem:[#allocation4 + $0x18] sm:$0xff] %vm389_vm1, %v1617_v8  ;;  %v3618_v41 = vadd.f32 %v3607_v36, %v1567_v50  ;;  %v1569_v32 = vadd.f32 %v1568_v31, %v1431_v51 }
0x100b   :  { %v1435_v14 = vpop.f32.mrf.mxu0 }
0x100c   :  { %v1619_v47 = vadd.f32 %v1611_v48, %v1569_v32  ;;  %v1573_v42 = vadd.f32 %v1572_v35, %v1435_v14  ;;  %v1598_v32 = vpop.f32.mrf.mxu1 }
0x100d   :  { %v1437_v52 = vpop.f32.mrf.mxu0 }
0x100e   :  { %1635 = vst.msk [vmem:[#allocation4 + $0x28] sm:$0xff] %vm389_vm1, %v1619_v47  ;;  %v3622_v45 = vadd.f32 %v3607_v36, %v1573_v42  ;;  %v1575_v46 = vadd.f32 %v1574_v39, %v1437_v52 }
0x100f   :  { %v1441_v53 = vpop.f32.mrf.mxu0 }
0x1010   :  { %v1621_v27 = vadd.f32 %v1611_v48, %v1575_v46  ;;  %v1579_v19 = vadd.f32 %v1578_v60, %v1441_v53 }
0x1011   :  { %v1443_v16 = vpop.f32.mrf.mxu0 }
0x1012   :  { %1637 = vst.msk [vmem:[#allocation4 + $0x38] sm:$0xff] %vm389_vm1, %v1621_v27  ;;  %v3626_v62 = vadd.f32 %v3607_v36, %v1579_v19  ;;  %v1581_v31 = vadd.f32 %v1580_v2, %v1443_v16  ;;  %v3644_v19 = vld [vmem:[%s3920_s9 + $0x1] ss:$0 sm:$0xff] }
0x1013   :  { %v1447_v35 = vpop.f32.mrf.mxu0 }
0x1014   :  { %v1623_v43 = vadd.f32 %v1611_v48, %v1581_v31  ;;  %v1585_v44 = vadd.f32 %v1584_v9, %v1447_v35  ;;  %v1672_v35 = vld [vmem:[#allocation4 + $0x8] sm:$0xff] }
0x1015   :  { %v1449_v49 = vpop.f32.mrf.mxu0 }
0x1016   :  { %1639 = vst.msk [vmem:[#allocation4 + $0x48] sm:$0xff] %vm389_vm1, %v1623_v43  ;;  %v3630_v39 = vadd.f32 %v3607_v36, %v1585_v44  ;;  %v1587_v59 = vadd.f32 %v1586_v58, %v1449_v49 }
0x1017   :  { %v1453_v60 = vpop.f32.mrf.mxu0 }
0x1018   :  { %v1625_v0 = vadd.f32 %v1611_v48, %v1587_v59  ;;  %v1591_v6 = vadd.f32 %v1590_v23, %v1453_v60 }
0x1019   :  { %v1455_v1 = vpop.f32.mrf.mxu0 }
0x101a   :  { %1641 = vst.msk [vmem:[#allocation4 + $0x58] sm:$0xff] %vm389_vm1, %v1625_v0  ;;  %v3634_v2 = vadd.f32 %v3607_v36, %v1591_v6  ;;  %v1593_v7 = vadd.f32 %v1592_v63, %v1455_v1 }
0x101b   :  { %v1459_v8 = vpop.f32.mrf.mxu0 }
0x101c   :  { %v1627_v50 = vadd.f32 %v1611_v48, %v1593_v7  ;;  %v1597_v51 = vadd.f32 %v1596_v12, %v1459_v8 }
0x101d   :  { %v1461_v9 = vpop.f32.mrf.mxu0 }
0x101e   :  { %1643 = vst.msk [vmem:[#allocation4 + $0x68] sm:$0xff] %vm389_vm1, %v1627_v50  ;;  %v3638_v14 = vadd.f32 %v3607_v36, %v1597_v51  ;;  %v1599_v47 = vadd.f32 %v1598_v32, %v1461_v9 }
0x101f   :  { %v1739_v42 = vpop.f32.mrf.mxu0 }
0x1020   :  { %v1629_v52 = vadd.f32 %v1611_v48, %v1599_v47  ;;  %v1744_v46 = vadd.f32 %v1739_v42, %v1614_v54 }
0x1021   :  { %v1741_v16 = vpop.f32.mrf.mxu0 }
0x1022   :  { %1645 = vst.msk [vmem:[#allocation4 + $0x78] sm:$0xff] %vm389_vm1, %v1629_v52  ;;  %v2611_v58 = vmul.f32 -1.442695, %v1744_v46  ;;  %v1751_v36 = vadd.f32 %v3644_v19, %v1741_v16  ;;  %v1770_v52 = vld [vmem:[#allocation4 + $0x18] sm:$0xff] }
0x1024   :  { %2678 = vpow2.f32 %v2611_v58 }
0x1031   :  { %v2679_v53 = vpop.eup %2678 }
0x1032   :  { %v1748_v27 = vadd.f32 1.0, %v2679_v53 }
0x1034   :  { %2680 = vrcp.f32 %v1748_v27 }
0x1041   :  { %v2681_v31 = vpop.eup %2680 }
0x1042   :  { %v1752_v23 = vmul.f32 %v2681_v31, %v1751_v36  ;;  %v1755_v43 = vsub.f32 1.0, %v2681_v31  ;;  %v1761_v49 = vmul.f32 0.0, %v2681_v31 }
0x1044   :  { %v1753_v48 = vadd.f32 %v1752_v23, %v1672_v35 }
0x1046   :  { %2682 = vtanh.f32 %v1753_v48 }
0x1053   :  { %v2683_v54 = vpop.eup %2682 }
0x1054   :  { %1757 = vrot.lane.b32.xlu1 %v2683_v54, %s2727_s14 }
0x10c6   :  { %v1758_v44 = vpop.permute.xlu1 %1757 }
0x10c7   :  { %v1760_v59 = vmul.f32 %v1758_v44, %v1755_v43 }
0x10c9   :  { %v1762_v63 = vadd.f32 %v1761_v49, %v1760_v59 }
0x10cb   :  { %1764 = vrot.lane.b32.xlu0 %v1762_v63, %s2727_s14 }
0x113d   :  { %v1765_v60 = vpop.permute.xlu0 %1764 }
0x113e   :  { %v1767_v0 = vsel %vm38_vm2, %v1765_v60, 0.0 }
0x113f   :  { %1768 = vst.msk [vmem:[%s3924_s10] sm:$0xff] %vm389_vm1, %v1767_v0  ;;  %1862 = vrot.lane.b32.xlu0 %v1767_v0, %s2727_s14  ;;  %2612 = vmatmul.mubr.msk.f32.vlgmr.msra.gmra.mxu1 %vm389_vm1, %v1767_v0 }
0x1140   :  { %1999 = vmatpush1.msra.mxu1 %v3447_v13  ;;  %2046 = vmatprep.mubr.f32.mxu1 %v2726_v3 }
0x1141   :  { %2000 = vmatprep.subr.mxu1 %v3454_v40 }
0x1142   :  { %2001 = vmatpush1.msra.mxu1 %v3459_v15 }
0x1143   :  { %2002 = vmatprep.subr.mxu1 %v3466_v17 }
0x1144   :  { %2003 = vmatpush1.msra.mxu1 %v3471_v18 }
0x1145   :  { %2004 = vmatprep.subr.mxu1 %v3478_v20 }
0x1146   :  { %v2504_v6 = vld [vmem:[%s3924_s10] sm:$0xff]  ;;  %2005 = vmatpush1.msra.mxu1 %v3483_v21 }
0x1147   :  { %v2520_v12 = vmul.f32 %v2512_v57, %v2504_v6  ;;  %2006 = vmatprep.subr.mxu1 %v3490_v24 }
0x1148   :  { %2007 = vmatpush1.msra.mxu1 %v3495_v25 }
0x1149   :  { %2528 = vst.msk [vmem:[%s3924_s10] sm:$0xff] %vm389_vm1, %v2520_v12  ;;  %2008 = vmatprep.subr.mxu1 %v3502_v26  ;;  %v1874_v12 = vld [vmem:[#allocation4 + $0x28] sm:$0xff] }
0x114a   :  { %2009 = vmatpush1.msra.mxu1 %v3507_v29 }
0x114b   :  { %2010 = vmatprep.subr.mxu1 %v3514_v30 }
0x114c   :  { %2011 = vmatpush1.msra.mxu1 %v3519_v33 }
0x114d   :  { %2012 = vmatprep.subr.mxu1 %v3526_v34 }
0x114e   :  { %2013 = vmatpush1.msra.mxu1 %v3531_v37 }
0x114f   :  { %2206 = vmatprep.subr.mxu1 %v3441_v10 }
0x11b1   :  { %v1863_v27 = vpop.permute.xlu0 %1862 }
0x11ff   :  { %v1840_v1 = vpop.f32.mrf.mxu1 }
0x1200   :  { %v1845_v7 = vadd.f32 %v1840_v1, %v3614_v55 }
0x1201   :  { %v1842_v32 = vpop.f32.mrf.mxu1 }
0x1202   :  { %v2613_v8 = vmul.f32 -1.442695, %v1845_v7  ;;  %v1852_v9 = vadd.f32 %v3644_v19, %v1842_v32 }
0x1204   :  { %2684 = vpow2.f32 %v2613_v8 }
0x1211   :  { %v2685_v50 = vpop.eup %2684 }
0x1212   :  { %v1849_v51 = vadd.f32 1.0, %v2685_v50 }
0x1214   :  { %2686 = vrcp.f32 %v1849_v51 }
0x1221   :  { %v2687_v47 = vpop.eup %2686 }
0x1222   :  { %v1853_v42 = vmul.f32 %v2687_v47, %v1852_v9  ;;  %v1856_v53 = vsub.f32 1.0, %v2687_v47  ;;  %v1865_v55 = vmul.f32 %v2687_v47, %v1863_v27 }
0x1224   :  { %v1854_v46 = vadd.f32 %v1853_v42, %v1770_v52 }
0x1226   :  { %2688 = vtanh.f32 %v1854_v46 }
0x1233   :  { %v2689_v58 = vpop.eup %2688 }
0x1234   :  { %1858 = vrot.lane.b32.xlu1 %v2689_v58, %s2727_s14 }
0x12a6   :  { %v1859_v16 = vpop.permute.xlu1 %1858 }
0x12a7   :  { %v1861_v36 = vmul.f32 %v1859_v16, %v1856_v53 }
0x12a9   :  { %v1866_v31 = vadd.f32 %v1865_v55, %v1861_v36 }
0x12ab   :  { %1868 = vrot.lane.b32.xlu1 %v1866_v31, %s2727_s14 }
0x131d   :  { %v1869_v23 = vpop.permute.xlu1 %1868 }
0x131e   :  { %v1871_v35 = vsel %vm40_vm3, %v1869_v23, %v1767_v0 }
0x131f   :  { %1872 = vst.msk [vmem:[%s3924_s10 + $0x8] sm:$0xff] %vm389_vm1, %v1871_v35  ;;  %1966 = vrot.lane.b32.xlu1 %v1871_v35, %s2727_s14  ;;  %2614 = vmatmul.mubr.msk.f32.vlgmr.msra.gmra.mxu0 %vm389_vm1, %v1871_v35 }
0x1320   :  { %2103 = vmatpush1.msra.mxu0 %v3447_v13  ;;  %2150 = vmatprep.mubr.f32.mxu0 %v2726_v3 }
0x1321   :  { %2104 = vmatprep.subr.mxu0 %v3454_v40 }
0x1322   :  { %2105 = vmatpush1.msra.mxu0 %v3459_v15 }
0x1323   :  { %2106 = vmatprep.subr.mxu0 %v3466_v17 }
0x1324   :  { %2107 = vmatpush1.msra.mxu0 %v3471_v18 }
0x1325   :  { %2108 = vmatprep.subr.mxu0 %v3478_v20 }
0x1326   :  { %v2505_v48 = vld [vmem:[%s3924_s10 + $0x8] sm:$0xff]  ;;  %2109 = vmatpush1.msra.mxu0 %v3483_v21 }
0x1327   :  { %v2521_v54 = vmul.f32 %v2513_v22, %v2505_v48  ;;  %2110 = vmatprep.subr.mxu0 %v3490_v24  ;;  %v1978_v22 = vld [vmem:[#allocation4 + $0x38] sm:$0xff] }
0x1328   :  { %2111 = vmatpush1.msra.mxu0 %v3495_v25 }
0x1329   :  { %2529 = vst.msk [vmem:[%s3924_s10 + $0x8] sm:$0xff] %vm389_vm1, %v2521_v54  ;;  %2112 = vmatprep.subr.mxu0 %v3502_v26 }
0x132a   :  { %2113 = vmatpush1.msra.mxu0 %v3507_v29 }
0x132b   :  { %2114 = vmatprep.subr.mxu0 %v3514_v30 }
0x132c   :  { %2115 = vmatpush1.msra.mxu0 %v3519_v33 }
0x132d   :  { %2116 = vmatprep.subr.mxu0 %v3526_v34 }
0x132e   :  { %2117 = vmatpush1.msra.mxu0 %v3531_v37 }
0x132f   :  { %2310 = vmatprep.subr.mxu0 %v3441_v10 }
0x1391   :  { %v1967_v50 = vpop.permute.xlu1 %1966 }
0x13df   :  { %v1944_v43 = vpop.f32.mrf.mxu0 }
0x13e0   :  { %v1949_v44 = vadd.f32 %v1944_v43, %v3618_v41 }
0x13e1   :  { %v1946_v60 = vpop.f32.mrf.mxu0 }
0x13e2   :  { %v2615_v49 = vmul.f32 -1.442695, %v1949_v44  ;;  %v1956_v0 = vadd.f32 %v3644_v19, %v1946_v60 }
0x13e4   :  { %2690 = vpow2.f32 %v2615_v49 }
0x13f1   :  { %v2691_v59 = vpop.eup %2690 }
0x13f2   :  { %v1953_v63 = vadd.f32 1.0, %v2691_v59 }
0x13f4   :  { %2692 = vrcp.f32 %v1953_v63 }
0x1401   :  { %v2693_v57 = vpop.eup %2692 }
0x1402   :  { %v1957_v6 = vmul.f32 %v2693_v57, %v1956_v0  ;;  %v1960_v8 = vsub.f32 1.0, %v2693_v57  ;;  %v1969_v41 = vmul.f32 %v2693_v57, %v1967_v50 }
0x1404   :  { %v1958_v1 = vadd.f32 %v1957_v6, %v1874_v12 }
0x1406   :  { %2694 = vtanh.f32 %v1958_v1 }
0x1413   :  { %v2695_v7 = vpop.eup %2694 }
0x1414   :  { %1962 = vrot.lane.b32.xlu0 %v2695_v7, %s2727_s14 }
0x1486   :  { %v1963_v51 = vpop.permute.xlu0 %1962 }
0x1487   :  { %v1965_v32 = vmul.f32 %v1963_v51, %v1960_v8 }
0x1489   :  { %v1970_v9 = vadd.f32 %v1969_v41, %v1965_v32 }
0x148b   :  { %1972 = vrot.lane.b32.xlu0 %v1970_v9, %s2727_s14  ;;  %v2082_v9 = vld [vmem:[#allocation4 + $0x48] sm:$0xff] }
0x14fd   :  { %v1973_v47 = vpop.permute.xlu0 %1972 }
0x14fe   :  { %v1975_v42 = vsel %vm42_vm4, %v1973_v47, %v1871_v35 }
0x14ff   :  { %1976 = vst.msk [vmem:[%s3924_s10 + $0x10] sm:$0xff] %vm389_vm1, %v1975_v42  ;;  %2070 = vrot.lane.b32.xlu0 %v1975_v42, %s2727_s14  ;;  %2616 = vmatmul.mubr.msk.f32.vlgmr.msra.gmra.mxu1 %vm389_vm1, %v1975_v42 }
0x1500   :  { %2207 = vmatpush1.msra.mxu1 %v3447_v13  ;;  %2254 = vmatprep.mubr.f32.mxu1 %v2726_v3 }
0x1501   :  { %2208 = vmatprep.subr.mxu1 %v3454_v40 }
0x1502   :  { %2209 = vmatpush1.msra.mxu1 %v3459_v15 }
0x1503   :  { %2210 = vmatprep.subr.mxu1 %v3466_v17 }
0x1504   :  { %2211 = vmatpush1.msra.mxu1 %v3471_v18 }
0x1505   :  { %2212 = vmatprep.subr.mxu1 %v3478_v20 }
0x1506   :  { %v2506_v52 = vld [vmem:[%s3924_s10 + $0x10] sm:$0xff]  ;;  %2213 = vmatpush1.msra.mxu1 %v3483_v21 }
0x1507   :  { %v2522_v46 = vmul.f32 %v2514_v5, %v2506_v52  ;;  %2214 = vmatprep.subr.mxu1 %v3490_v24 }
0x1508   :  { %2215 = vmatpush1.msra.mxu1 %v3495_v25 }
0x1509   :  { %2530 = vst.msk [vmem:[%s3924_s10 + $0x10] sm:$0xff] %vm389_vm1, %v2522_v46  ;;  %2216 = vmatprep.subr.mxu1 %v3502_v26 }
0x150a   :  { %2217 = vmatpush1.msra.mxu1 %v3507_v29 }
0x150b   :  { %2218 = vmatprep.subr.mxu1 %v3514_v30 }
0x150c   :  { %2219 = vmatpush1.msra.mxu1 %v3519_v33 }
0x150d   :  { %2220 = vmatprep.subr.mxu1 %v3526_v34 }
0x150e   :  { %2221 = vmatpush1.msra.mxu1 %v3531_v37 }
0x150f   :  { %2414 = vmatprep.subr.mxu1 %v3441_v10 }
0x1571   :  { %v2071_v43 = vpop.permute.xlu0 %2070 }
0x15bf   :  { %v2048_v58 = vpop.f32.mrf.mxu1 }
0x15c0   :  { %v2053_v53 = vadd.f32 %v2048_v58, %v3622_v45 }
0x15c1   :  { %v2050_v36 = vpop.f32.mrf.mxu1 }
0x15c2   :  { %v2617_v27 = vmul.f32 -1.442695, %v2053_v53  ;;  %v2060_v31 = vadd.f32 %v3644_v19, %v2050_v36 }
0x15c4   :  { %2696 = vpow2.f32 %v2617_v27 }
0x15d1   :  { %v2697_v16 = vpop.eup %2696 }
0x15d2   :  { %v2057_v55 = vadd.f32 1.0, %v2697_v16 }
0x15d4   :  { %2698 = vrcp.f32 %v2057_v55 }
0x15e1   :  { %v2699_v23 = vpop.eup %2698 }
0x15e2   :  { %v2061_v35 = vmul.f32 %v2699_v23, %v2060_v31  ;;  %v2064_v10 = vsub.f32 1.0, %v2699_v23  ;;  %v2073_v45 = vmul.f32 %v2699_v23, %v2071_v43 }
0x15e4   :  { %v2062_v48 = vadd.f32 %v2061_v35, %v1978_v22  ;;  %v2517_v22 = vld [vmem:[%s3921_s2 + $0x28] sm:$0xff] }
0x15e6   :  { %2700 = vtanh.f32 %v2062_v48 }
0x15f3   :  { %v2701_v54 = vpop.eup %2700 }
0x15f4   :  { %2066 = vrot.lane.b32.xlu1 %v2701_v54, %s2727_s14 }
0x1666   :  { %v2067_v44 = vpop.permute.xlu1 %2066 }
0x1667   :  { %v2069_v49 = vmul.f32 %v2067_v44, %v2064_v10 }
0x1669   :  { %v2074_v59 = vadd.f32 %v2073_v45, %v2069_v49 }
0x166b   :  { %2076 = vrot.lane.b32.xlu1 %v2074_v59, %s2727_s14 }
0x16dd   :  { %v2077_v63 = vpop.permute.xlu1 %2076 }
0x16de   :  { %v2079_v60 = vsel %vm44_vm5, %v2077_v63, %v1975_v42 }
0x16df   :  { %2080 = vst.msk [vmem:[%s3924_s10 + $0x18] sm:$0xff] %vm389_vm1, %v2079_v60  ;;  %2174 = vrot.lane.b32.xlu1 %v2079_v60, %s2727_s14  ;;  %2618 = vmatmul.mubr.msk.f32.vlgmr.msra.gmra.mxu0 %vm389_vm1, %v2079_v60 }
0x16e0   :  { %2311 = vmatpush1.msra.mxu0 %v3447_v13  ;;  %2358 = vmatprep.mubr.f32.mxu0 %v2726_v3 }
0x16e1   :  { %2312 = vmatprep.subr.mxu0 %v3454_v40 }
0x16e2   :  { %2313 = vmatpush1.msra.mxu0 %v3459_v15 }
0x16e3   :  { %2314 = vmatprep.subr.mxu0 %v3466_v17 }
0x16e4   :  { %2315 = vmatpush1.msra.mxu0 %v3471_v18 }
0x16e5   :  { %2316 = vmatprep.subr.mxu0 %v3478_v20 }
0x16e6   :  { %v2507_v0 = vld [vmem:[%s3924_s10 + $0x18] sm:$0xff]  ;;  %2317 = vmatpush1.msra.mxu0 %v3483_v21 }
0x16e7   :  { %v2523_v57 = vmul.f32 %v2515_v56, %v2507_v0  ;;  %2318 = vmatprep.subr.mxu0 %v3490_v24  ;;  %v2290_v56 = vld [vmem:[#allocation4 + $0x68] sm:$0xff] }
0x16e8   :  { %2319 = vmatpush1.msra.mxu0 %v3495_v25 }
0x16e9   :  { %2531 = vst.msk [vmem:[%s3924_s10 + $0x18] sm:$0xff] %vm389_vm1, %v2523_v57  ;;  %2320 = vmatprep.subr.mxu0 %v3502_v26 }
0x16ea   :  { %2321 = vmatpush1.msra.mxu0 %v3507_v29 }
0x16eb   :  { %2322 = vmatprep.subr.mxu0 %v3514_v30 }
0x16ec   :  { %2323 = vmatpush1.msra.mxu0 %v3519_v33 }
0x16ed   :  { %2324 = vmatprep.subr.mxu0 %v3526_v34 }
0x16ee   :  { %2325 = vmatpush1.msra.mxu0 %v3531_v37 }
0x1751   :  { %v2175_v52 = vpop.permute.xlu1 %2174 }
0x179f   :  { %v2152_v6 = vpop.f32.mrf.mxu0 }
0x17a0   :  { %v2157_v12 = vadd.f32 %v2152_v6, %v3626_v62 }
0x17a1   :  { %v2154_v50 = vpop.f32.mrf.mxu0 }
0x17a2   :  { %v2619_v1 = vmul.f32 -1.442695, %v2157_v12  ;;  %v2164_v51 = vadd.f32 %v3644_v19, %v2154_v50 }
0x17a4   :  { %2702 = vpow2.f32 %v2619_v1 }
0x17b1   :  { %v2703_v7 = vpop.eup %2702 }
0x17b2   :  { %v2161_v8 = vadd.f32 1.0, %v2703_v7 }
0x17b4   :  { %2704 = vrcp.f32 %v2161_v8 }
0x17c1   :  { %v2705_v41 = vpop.eup %2704 }
0x17c2   :  { %v2165_v32 = vmul.f32 %v2705_v41, %v2164_v51  ;;  %v2168_v5 = vsub.f32 1.0, %v2705_v41  ;;  %v2177_v62 = vmul.f32 %v2705_v41, %v2175_v52  ;;  %v2518_v41 = vld [vmem:[%s3921_s2 + $0x30] sm:$0xff] }
0x17c4   :  { %v2166_v47 = vadd.f32 %v2165_v32, %v2082_v9 }
0x17c6   :  { %2706 = vtanh.f32 %v2166_v47 }
0x17d3   :  { %v2707_v42 = vpop.eup %2706 }
0x17d4   :  { %2170 = vrot.lane.b32.xlu0 %v2707_v42, %s2727_s14 }
0x1846   :  { %v2171_v46 = vpop.permute.xlu0 %2170 }
0x1847   :  { %v2173_v58 = vmul.f32 %v2171_v46, %v2168_v5 }
0x1849   :  { %v2178_v53 = vadd.f32 %v2177_v62, %v2173_v58 }
0x184b   :  { %2180 = vrot.lane.b32.xlu0 %v2178_v53, %s2727_s14 }
0x18bd   :  { %v2181_v27 = vpop.permute.xlu0 %2180 }
0x18be   :  { %v2183_v16 = vsel %vm46_vm6, %v2181_v27, %v2079_v60 }
0x18bf   :  { %2184 = vst.msk [vmem:[%s3924_s10 + $0x20] sm:$0xff] %vm389_vm1, %v2183_v16  ;;  %2278 = vrot.lane.b32.xlu0 %v2183_v16, %s2727_s14  ;;  %2620 = vmatmul.mubr.msk.f32.vlgmr.msra.gmra.mxu1 %vm389_vm1, %v2183_v16 }
0x18c0   :  { %2415 = vmatpush1.msra.mxu1 %v3447_v13  ;;  %2462 = vmatprep.mubr.f32.mxu1 %v2726_v3 }
0x18c1   :  { %2416 = vmatprep.subr.mxu1 %v3454_v40 }
0x18c2   :  { %2417 = vmatpush1.msra.mxu1 %v3459_v15 }
0x18c3   :  { %2418 = vmatprep.subr.mxu1 %v3466_v17 }
0x18c4   :  { %2419 = vmatpush1.msra.mxu1 %v3471_v18 }
0x18c5   :  { %2420 = vmatprep.subr.mxu1 %v3478_v20 }
0x18c6   :  { %v2508_v13 = vld [vmem:[%s3924_s10 + $0x20] sm:$0xff]  ;;  %2421 = vmatpush1.msra.mxu1 %v3483_v21 }
0x18c7   :  { %v2524_v3 = vmul.f32 %v2516_v4, %v2508_v13  ;;  %2422 = vmatprep.subr.mxu1 %v3490_v24  ;;  %v2394_v13 = vld [vmem:[#allocation4 + $0x78] sm:$0xff] }
0x18c8   :  { %2423 = vmatpush1.msra.mxu1 %v3495_v25 }
0x18c9   :  { %2532 = vst.msk [vmem:[%s3924_s10 + $0x20] sm:$0xff] %vm389_vm1, %v2524_v3  ;;  %2424 = vmatprep.subr.mxu1 %v3502_v26 }
0x18ca   :  { %2425 = vmatpush1.msra.mxu1 %v3507_v29  ;;  %v2186_v29 = vld [vmem:[#allocation4 + $0x58] sm:$0xff] }
0x18cb   :  { %2426 = vmatprep.subr.mxu1 %v3514_v30 }
0x18cc   :  { %2427 = vmatpush1.msra.mxu1 %v3519_v33 }
0x18cd   :  { %2428 = vmatprep.subr.mxu1 %v3526_v34 }
0x18ce   :  { %2429 = vmatpush1.msra.mxu1 %v3531_v37 }
0x1931   :  { %v2279_v37 = vpop.permute.xlu0 %2278 }
0x197f   :  { %v2256_v40 = vpop.f32.mrf.mxu1 }
0x1980   :  { %v2261_v15 = vadd.f32 %v2256_v40, %v3630_v39 }
0x1981   :  { %v2258_v21 = vpop.f32.mrf.mxu1 }
0x1982   :  { %v2621_v17 = vmul.f32 -1.442695, %v2261_v15  ;;  %v2268_v24 = vadd.f32 %v3644_v19, %v2258_v21 }
0x1984   :  { %2708 = vpow2.f32 %v2621_v17 }
0x1991   :  { %v2709_v18 = vpop.eup %2708 }
0x1992   :  { %v2265_v20 = vadd.f32 1.0, %v2709_v18 }
0x1994   :  { %2710 = vrcp.f32 %v2265_v20 }
0x19a1   :  { %v2711_v25 = vpop.eup %2710 }
0x19a2   :  { %v2269_v26 = vmul.f32 %v2711_v25, %v2268_v24  ;;  %v2272_v34 = vsub.f32 1.0, %v2711_v25  ;;  %v2281_v39 = vmul.f32 %v2711_v25, %v2279_v37 }
0x19a4   :  { %v2270_v30 = vadd.f32 %v2269_v26, %v2186_v29 }
0x19a6   :  { %2712 = vtanh.f32 %v2270_v30 }
0x19b3   :  { %v2713_v33 = vpop.eup %2712 }
0x19b4   :  { %2274 = vrot.lane.b32.xlu1 %v2713_v33, %s2727_s14 }
0x1a26   :  { %v2275_v55 = vpop.permute.xlu1 %2274 }
0x1a27   :  { %v2277_v36 = vmul.f32 %v2275_v55, %v2272_v34 }
0x1a29   :  { %v2282_v31 = vadd.f32 %v2281_v39, %v2277_v36 }
0x1a2b   :  { %2284 = vrot.lane.b32.xlu1 %v2282_v31, %s2727_s14 }
0x1a9d   :  { %v2285_v23 = vpop.permute.xlu1 %2284 }
0x1a9e   :  { %v2287_v35 = vsel %vm48_vm7, %v2285_v23, %v2183_v16 }
0x1a9f   :  { %2288 = vst.msk [vmem:[%s3924_s10 + $0x28] sm:$0xff] %vm389_vm1, %v2287_v35  ;;  %2382 = vrot.lane.b32.xlu1 %v2287_v35, %s2727_s14  ;;  %2622 = vmatmul.mubr.msk.f32.vlgmr.msra.gmra.mxu0 %vm389_vm1, %v2287_v35 }
0x1aa6   :  { %v2509_v48 = vld [vmem:[%s3924_s10 + $0x28] sm:$0xff] }
0x1aa7   :  { %v2525_v54 = vmul.f32 %v2517_v22, %v2509_v48 }
0x1aa9   :  { %2533 = vst.msk [vmem:[%s3924_s10 + $0x28] sm:$0xff] %vm389_vm1, %v2525_v54 }
0x1b11   :  { %v2383_v12 = vpop.permute.xlu1 %2382 }
0x1b5f   :  { %v2360_v28 = vpop.f32.mrf.mxu0 }
0x1b60   :  { %v2365_v10 = vadd.f32 %v2360_v28, %v3634_v2 }
0x1b61   :  { %v2362_v49 = vpop.f32.mrf.mxu0 }
0x1b62   :  { %v2623_v43 = vmul.f32 -1.442695, %v2365_v10  ;;  %v2372_v59 = vadd.f32 %v3644_v19, %v2362_v49 }
0x1b64   :  { %2714 = vpow2.f32 %v2623_v43 }
0x1b71   :  { %v2715_v44 = vpop.eup %2714 }
0x1b72   :  { %v2369_v45 = vadd.f32 1.0, %v2715_v44 }
0x1b74   :  { %2716 = vrcp.f32 %v2369_v45 }
0x1b81   :  { %v2717_v63 = vpop.eup %2716 }
0x1b82   :  { %v2373_v60 = vmul.f32 %v2717_v63, %v2372_v59  ;;  %v2376_v6 = vsub.f32 1.0, %v2717_v63  ;;  %v2385_v2 = vmul.f32 %v2717_v63, %v2383_v12 }
0x1b84   :  { %v2374_v0 = vadd.f32 %v2373_v60, %v2290_v56 }
0x1b86   :  { %2718 = vtanh.f32 %v2374_v0 }
0x1b93   :  { %v2719_v57 = vpop.eup %2718 }
0x1b94   :  { %2378 = vrot.lane.b32.xlu0 %v2719_v57, %s2727_s14 }
0x1c06   :  { %v2379_v1 = vpop.permute.xlu0 %2378 }
0x1c07   :  { %v2381_v7 = vmul.f32 %v2379_v1, %v2376_v6 }
0x1c09   :  { %v2386_v8 = vadd.f32 %v2385_v2, %v2381_v7 }
0x1c0b   :  { %2388 = vrot.lane.b32.xlu0 %v2386_v8, %s2727_s14 }
0x1c7d   :  { %v2389_v50 = vpop.permute.xlu0 %2388 }
0x1c7e   :  { %v2391_v51 = vsel %vm50_vm8, %v2389_v50, %v2287_v35 }
0x1c7f   :  { %2392 = vst.msk [vmem:[%s3924_s10 + $0x30] sm:$0xff] %vm389_vm1, %v2391_v51  ;;  %2486 = vrot.lane.b32.xlu0 %v2391_v51, %s2727_s14  ;;  %2624 = vmatmul.mubr.msk.f32.vlgmr.msra.gmra.mxu1 %vm389_vm1, %v2391_v51 }
0x1c83   :  { %1258 = vrot.lane.b32.xlu0 %v3545_v61, %s2728_s7 }
0x1c86   :  { %v2510_v11 = vld [vmem:[%s3924_s10 + $0x30] sm:$0xff] }
0x1c87   :  { %v2526_v32 = vmul.f32 %v2518_v41, %v2510_v11 }
0x1c89   :  { %2534 = vst.msk [vmem:[%s3924_s10 + $0x30] sm:$0xff] %vm389_vm1, %v2526_v32 }
0x1cf1   :  { %v2487_v9 = vpop.permute.xlu0 %2486 }
0x1cf5   :  { %v1259_v47 = vpop.permute.xlu0 %1258 }
0x1cf6   :  { %v1261_v42 = vadd.f32 %v1259_v47, %v3545_v61 }
0x1cf8   :  { %1262 = vst.msk [vmem:[%s3925_s11] sm:$0xff] %vm85_vm0, %v1261_v42 }
0x1d3f   :  { %v2464_v5 = vpop.f32.mrf.mxu1 }
0x1d40   :  { %v2469_v52 = vadd.f32 %v2464_v5, %v3638_v14 }
0x1d41   :  { %v2466_v53 = vpop.f32.mrf.mxu1 }
0x1d42   :  { %v2625_v46 = vmul.f32 -1.442695, %v2469_v52  ;;  %v2476_v27 = vadd.f32 %v3644_v19, %v2466_v53  ;;  %v2519_v19 = vld [vmem:[%s3921_s2 + $0x38] sm:$0xff] }
0x1d44   :  { %2720 = vpow2.f32 %v2625_v46 }
0x1d51   :  { %v2721_v62 = vpop.eup %2720 }
0x1d52   :  { %v2473_v58 = vadd.f32 1.0, %v2721_v62 }
0x1d54   :  { %2722 = vrcp.f32 %v2473_v58 }
0x1d61   :  { %v2723_v16 = vpop.eup %2722 }
0x1d62   :  { %v2477_v4 = vmul.f32 %v2723_v16, %v2476_v27  ;;  %v2480_v40 = vsub.f32 1.0, %v2723_v16  ;;  %v2489_v17 = vmul.f32 %v2723_v16, %v2487_v9 }
0x1d64   :  { %v2478_v61 = vadd.f32 %v2477_v4, %v2394_v13 }
0x1d66   :  { %2724 = vtanh.f32 %v2478_v61 }
0x1d73   :  { %v2725_v3 = vpop.eup %2724 }
0x1d74   :  { %2482 = vrot.lane.b32.xlu1 %v2725_v3, %s2727_s14 }
0x1de6   :  { %v2483_v15 = vpop.permute.xlu1 %2482 }
0x1de7   :  { %v2485_v14 = vmul.f32 %v2483_v15, %v2480_v40 }
0x1de9   :  { %v2490_v18 = vadd.f32 %v2489_v17, %v2485_v14 }
0x1deb   :  { %2492 = vrot.lane.b32.xlu1 %v2490_v18, %s2727_s14 }
0x1e5d   :  { %v2493_v20 = vpop.permute.xlu1 %2492 }
0x1e5e   :  { %v2495_v21 = vsel %vm52_vm9, %v2493_v20, %v2391_v51 }
0x1e5f   :  { %2498 = vrot.lane.b32.xlu1 %v2495_v21, %s2728_s7  ;;  %2496 = vst.msk [vmem:[%s3924_s10 + $0x38] sm:$0xff] %vm389_vm1, %v2495_v21 }
0x1e66   :  { %v2511_v24 = vld [vmem:[%s3924_s10 + $0x38] sm:$0xff] }
0x1e67   :  { %v2527_v25 = vmul.f32 %v2519_v19, %v2511_v24 }
0x1e69   :  { %2535 = vst.msk [vmem:[%s3924_s10 + $0x38] sm:$0xff] %vm389_vm1, %v2527_v25 }
0x1ed1   :  { %v2499_v38 = vpop.permute.xlu1 %2498 }
0x1ed2   :  { %v2501_v26 = vadd.f32 %v2499_v38, %v2495_v21 }
0x1ed4   :  { %2626 = vst.msk [vmem:[%s3925_s11 + $0x8] sm:$0xff] %vm85_vm0, %v2501_v26 }

</bundles_post_ra>
